<compile_context>
chip_gen: v6e
topology: v6e:2x2x1
jax: 0.10.0
libtpu: 0.0.40
codegen_flags: <defaults>
</compile_context>

<pallas_src>
import jax
import jax.numpy as jnp
import numpy as np
from jax.experimental import pallas as pl
from jax.experimental.pallas import tpu as pltpu


def mlp_simple_kernel(alpha_ref,                       # SMEM (scalar prefetch), f32[9]
                      ge_ref, d_ref,                   # activation tiles (TB,256),(TB,56) bf16
                      gw0, gb0, gw1, gb1, gw2, gb2,    # geMLP params (W bf16, b f32)
                      dw0, db0, dw1, db1, dw2, db2,    # dMLP params
                      cw0, cb0, cw1, cb1, cw2, cb2,    # combineMLP layers 0..2
                      cw3_row, cb3,                    # final layer: f32 (1,64) row + (1,1)
                      out_ref,                         # output tile (TB,1) f32
                      cat_ref):                        # VMEM scratch (TB,128) bf16
    def lin_act(x_b16, w_ref, b_ref, alpha):
        # bf16 MXU matmul, f32 accumulate, f32 bias + PReLU (VPU), round to bf16 for
        # the next layer (halves spill/vst traffic; identical numerics to casting the
        # next layer's LHS to bf16).
        y = jnp.dot(x_b16, w_ref[...], preferred_element_type=jnp.float32) + b_ref[...]
        y = jnp.maximum(y, 0.0) + alpha * jnp.minimum(y, 0.0)   # PReLU, scalar slope
        return y.astype(jnp.bfloat16)

    # ---- geMLP: 256 -> 256 -> 256 -> 64, PReLU after each Linear ----
    ge = ge_ref[...]                                   # bf16 (TB,256)
    ge = lin_act(ge, gw0, gb0, alpha_ref[0])
    ge = lin_act(ge, gw1, gb1, alpha_ref[1])
    ge = lin_act(ge, gw2, gb2, alpha_ref[2])           # bf16 (TB,64)

    # ---- dMLP: 56 -> 128 -> 128 -> 64, PReLU after each Linear ----
    d = d_ref[...]                                     # bf16 (TB,56)
    d = lin_act(d, dw0, db0, alpha_ref[3])
    d = lin_act(d, dw1, db1, alpha_ref[4])
    d = lin_act(d, dw2, db2, alpha_ref[5])             # bf16 (TB,64)

    # ---- combineMLP on cat([ge, d], dim=1): 128 -> 128 -> 128 -> 64 -> 1 ----
    # In-kernel concat: ge -> lanes 0..63, d -> lanes 64..127 of a bf16 VMEM scratch,
    # then a single (TB,128)x(128,128) MXU pass (vs two K=64 passes previously).
    cat_ref[:, 0:64] = ge
    cat_ref[:, 64:128] = d
    c = lin_act(cat_ref[...], cw0, cb0, alpha_ref[6])
    c = lin_act(c, cw1, cb1, alpha_ref[7])
    c = lin_act(c, cw2, cb2, alpha_ref[8])             # bf16 (TB,64)

    # Final 64 -> 1: skip the MXU (N=1 wastes a full pass); VPU multiply + lane reduce.
    out = (jnp.sum(c.astype(jnp.float32) * cw3_row[...], axis=-1, keepdims=True)
           + cb3[...])
    out_ref[...] = out.astype(out_ref.dtype)


def _round_up(x, m):
    return ((x + m - 1) // m) * m


def mlp_simple_forward(params, ge, d, *, block_b=None):
    alphas = params["alphas"]          # f32[9], PReLU slopes
    L = params["layers"]               # list of (W bf16 (in,out), b f32 (1,out))

    # Final (64,1) weight -> f32 (1,64) row for the VPU lane-reduction.
    cw3, cb3 = L[9]
    cw3_row = cw3.astype(jnp.float32).reshape(1, 64)

    flat = []
    for i in range(9):                 # geMLP (0..2) + dMLP (3..5) + combineMLP (6..8)
        flat += [L[i][0], L[i][1]]
    flat += [cw3_row, cb3]             # final layer

    B = ge.shape[0]
    if block_b is None:
        # >= 2 grid steps when B allows it (v7x megacore), capped at 1024 to keep
        # double-buffered bf16 tiles small while amortizing per-step overhead.
        block_b = max(16, min(1024, _round_up(max((B + 1) // 2, 1), 16)))
    block_b = max(16, _round_up(block_b, 16))          # bf16 sublane tiling
    num_blocks = pl.cdiv(B, block_b)
    Bp = num_blocks * block_b

    # Wrapper-side bf16 cast: halves activation HBM traffic, numerics unchanged
    # (kernel fed bf16 to the MXU anyway).
    ge = ge.astype(jnp.bfloat16)
    d = d.astype(jnp.bfloat16)
    if Bp != B:
        ge = jnp.pad(ge, ((0, Bp - B), (0, 0)))
        d = jnp.pad(d, ((0, Bp - B), (0, 0)))

    def batch_spec(feat):
        return pl.BlockSpec((block_b, feat), lambda i, *_: (i, 0))

    def resident_spec(arr):
        # Constant index_map -> weights/biases stay VMEM-resident across grid steps.
        return pl.BlockSpec(arr.shape, lambda i, *_: (0, 0))

    in_specs = ([batch_spec(256), batch_spec(56)]
                + [resident_spec(p) for p in flat])
    out_specs = pl.BlockSpec((block_b, 1), lambda i, *_: (i, 0))

    out = pl.pallas_call(
        mlp_simple_kernel,
        out_shape=jax.ShapeDtypeStruct((Bp, 1), jnp.float32),
        grid_spec=pltpu.PrefetchScalarGridSpec(
            num_scalar_prefetch=1,          # alphas -> SMEM
            grid=(num_blocks,),
            in_specs=in_specs,
            out_specs=out_specs,
            scratch_shapes=[pltpu.VMEM((block_b, 128), jnp.bfloat16)],  # concat buffer
        ),
        compiler_params=pltpu.CompilerParams(
            dimension_semantics=("parallel",),   # lets v7x shard the batch axis over 2 TCs
        ),
    )(alphas, ge, d, *flat)
    return out[:B]


def init_params(key):
    """Deterministic init mimicking PyTorch defaults (uniform(-1/sqrt(fan_in), ...),
    PReLU slope = 0.25).  Weights stored (in_features, out_features) in bfloat16,
    biases (1, out_features) in float32."""
    dims = [
        (256, 256), (256, 256), (256, 64),           # geMLP
        (56, 128), (128, 128), (128, 64),            # dMLP
        (128, 128), (128, 128), (128, 64), (64, 1),  # combineMLP
    ]
    layers = []
    for (fi, fo) in dims:
        key, kw, kb = jax.random.split(key, 3)
        bound = 1.0 / np.sqrt(fi)
        W = jax.random.uniform(kw, (fi, fo), jnp.float32, -bound, bound).astype(jnp.bfloat16)
        b = jax.random.uniform(kb, (1, fo), jnp.float32, -bound, bound)
        layers.append((W, b))
    alphas = jnp.full((9,), 0.25, dtype=jnp.float32)  # nn.PReLU() default
    return {"layers": layers, "alphas": alphas}


def mlp_simple_ref(params, ge, d):
    """Pure-JAX reference (same bf16-weight / bf16-activation / f32-accumulate numerics)."""
    a = params["alphas"]
    L = params["layers"]

    def prelu(x, s):
        return jnp.maximum(x, 0.0) + s * jnp.minimum(x, 0.0)

    def lin(x, w, b):
        return jnp.dot(x.astype(jnp.bfloat16), w, preferred_element_type=jnp.float32) + b

    x = ge
    for i in range(3):
        x = prelu(lin(x, *L[i]), a[i])
    y = d
    for i in range(3):
        y = prelu(lin(y, *L[3 + i]), a[3 + i])
    c = jnp.concatenate([x, y], axis=1)
    for i in range(3):
        c = prelu(lin(c, *L[6 + i]), a[6 + i])
    return lin(c, *L[9])


if __name__ == "__main__":
    key = jax.random.PRNGKey(0)
    kp, kge, kd = jax.random.split(key, 3)
    params = init_params(kp)

    # --- small test (B=2, single grid step) ---
    B = 2
    geLatentVec = jax.random.normal(kge, (B, 256), dtype=jnp.float32)
    dLatentVec = jax.random.normal(kd, (B, 56), dtype=jnp.float32)
    out = jax.block_until_ready(mlp_simple_forward(params, geLatentVec, dLatentVec))
    ref = jax.block_until_ready(mlp_simple_ref(params, geLatentVec, dLatentVec))
    assert out.shape == (B, 1)
    np.testing.assert_allclose(np.asarray(out), np.asarray(ref), rtol=1e-3, atol=1e-3)

    # --- multi-block test (B > block_b, B not a multiple of block_b -> padding path) ---
    B2 = 300
    ge2 = jax.random.normal(jax.random.PRNGKey(1), (B2, 256), dtype=jnp.float32)
    d2 = jax.random.normal(jax.random.PRNGKey(2), (B2, 56), dtype=jnp.float32)
    out2 = jax.block_until_ready(mlp_simple_forward(params, ge2, d2, block_b=128))
    ref2 = jax.block_until_ready(mlp_simple_ref(params, ge2, d2))
    assert out2.shape == (B2, 1)
    np.testing.assert_allclose(np.asarray(out2), np.asarray(ref2), rtol=1e-3, atol=1e-3)

    print("KERNEL_OK")
</pallas_src>

<mosaic_0001>
module attributes {stable_mosaic.version = 11 : i64} {
  func.func @mlp_simple_kernel(%arg0: i32, %arg1: memref<9xf32, #tpu.memory_space<smem>>, %arg2: memref<16x256xbf16, #tpu.memory_space<vmem>>, %arg3: memref<16x56xbf16, #tpu.memory_space<vmem>>, %arg4: memref<256x256xbf16, #tpu.memory_space<vmem>>, %arg5: memref<1x256xf32, #tpu.memory_space<vmem>>, %arg6: memref<256x256xbf16, #tpu.memory_space<vmem>>, %arg7: memref<1x256xf32, #tpu.memory_space<vmem>>, %arg8: memref<256x64xbf16, #tpu.memory_space<vmem>>, %arg9: memref<1x64xf32, #tpu.memory_space<vmem>>, %arg10: memref<56x128xbf16, #tpu.memory_space<vmem>>, %arg11: memref<1x128xf32, #tpu.memory_space<vmem>>, %arg12: memref<128x128xbf16, #tpu.memory_space<vmem>>, %arg13: memref<1x128xf32, #tpu.memory_space<vmem>>, %arg14: memref<128x64xbf16, #tpu.memory_space<vmem>>, %arg15: memref<1x64xf32, #tpu.memory_space<vmem>>, %arg16: memref<128x128xbf16, #tpu.memory_space<vmem>>, %arg17: memref<1x128xf32, #tpu.memory_space<vmem>>, %arg18: memref<128x128xbf16, #tpu.memory_space<vmem>>, %arg19: memref<1x128xf32, #tpu.memory_space<vmem>>, %arg20: memref<128x64xbf16, #tpu.memory_space<vmem>>, %arg21: memref<1x64xf32, #tpu.memory_space<vmem>>, %arg22: memref<1x64xf32, #tpu.memory_space<vmem>>, %arg23: memref<1x1xf32, #tpu.memory_space<vmem>>, %arg24: memref<16x1xf32, #tpu.memory_space<vmem>>, %arg25: memref<16x128xbf16, #tpu.memory_space<vmem>>) attributes {dimension_semantics = [#tpu.dimension_semantics<parallel>], iteration_bounds = array<i64: 1>, scalar_prefetch = 1 : i64, scratch_operands = 1 : i64, tpu.core_type = #tpu.core_type<tc>, window_params = [{transform_indices = @transform_0, window_bounds = array<i64: 16, 256>}, {transform_indices = @transform_1, window_bounds = array<i64: 16, 56>}, {pipeline_mode = #tpu.pipeline_mode<synchronous>, transform_indices = @transform_2, window_bounds = array<i64: 256, 256>}, {pipeline_mode = #tpu.pipeline_mode<synchronous>, transform_indices = @transform_3, window_bounds = array<i64: 1, 256>}, {pipeline_mode = #tpu.pipeline_mode<synchronous>, transform_indices = @transform_4, window_bounds = array<i64: 256, 256>}, {pipeline_mode = #tpu.pipeline_mode<synchronous>, transform_indices = @transform_5, window_bounds = array<i64: 1, 256>}, {pipeline_mode = #tpu.pipeline_mode<synchronous>, transform_indices = @transform_6, window_bounds = array<i64: 256, 64>}, {pipeline_mode = #tpu.pipeline_mode<synchronous>, transform_indices = @transform_7, window_bounds = array<i64: 1, 64>}, {pipeline_mode = #tpu.pipeline_mode<synchronous>, transform_indices = @transform_8, window_bounds = array<i64: 56, 128>}, {pipeline_mode = #tpu.pipeline_mode<synchronous>, transform_indices = @transform_9, window_bounds = array<i64: 1, 128>}, {pipeline_mode = #tpu.pipeline_mode<synchronous>, transform_indices = @transform_10, window_bounds = array<i64: 128, 128>}, {pipeline_mode = #tpu.pipeline_mode<synchronous>, transform_indices = @transform_11, window_bounds = array<i64: 1, 128>}, {pipeline_mode = #tpu.pipeline_mode<synchronous>, transform_indices = @transform_12, window_bounds = array<i64: 128, 64>}, {pipeline_mode = #tpu.pipeline_mode<synchronous>, transform_indices = @transform_13, window_bounds = array<i64: 1, 64>}, {pipeline_mode = #tpu.pipeline_mode<synchronous>, transform_indices = @transform_14, window_bounds = array<i64: 128, 128>}, {pipeline_mode = #tpu.pipeline_mode<synchronous>, transform_indices = @transform_15, window_bounds = array<i64: 1, 128>}, {pipeline_mode = #tpu.pipeline_mode<synchronous>, transform_indices = @transform_16, window_bounds = array<i64: 128, 128>}, {pipeline_mode = #tpu.pipeline_mode<synchronous>, transform_indices = @transform_17, window_bounds = array<i64: 1, 128>}, {pipeline_mode = #tpu.pipeline_mode<synchronous>, transform_indices = @transform_18, window_bounds = array<i64: 128, 64>}, {pipeline_mode = #tpu.pipeline_mode<synchronous>, transform_indices = @transform_19, window_bounds = array<i64: 1, 64>}, {pipeline_mode = #tpu.pipeline_mode<synchronous>, transform_indices = @transform_20, window_bounds = array<i64: 1, 64>}, {pipeline_mode = #tpu.pipeline_mode<synchronous>, transform_indices = @transform_21, window_bounds = array<i64: 1, 1>}, {transform_indices = @transform_22, window_bounds = array<i64: 16, 1>}]} {
    %c0 = arith.constant 0 : index
    %c0_0 = arith.constant 0 : index
    %0 = vector.load %arg2[%c0, %c0_0] : memref<16x256xbf16, #tpu.memory_space<vmem>>, vector<16x256xbf16>
    %c0_1 = arith.constant 0 : index
    %1 = memref.load %arg1[%c0_1] : memref<9xf32, #tpu.memory_space<smem>>
    %c0_2 = arith.constant 0 : index
    %c0_3 = arith.constant 0 : index
    %2 = vector.load %arg4[%c0_2, %c0_3] : memref<256x256xbf16, #tpu.memory_space<vmem>>, vector<256x256xbf16>
    %cst = arith.constant dense<0.000000e+00> : vector<16x256xf32>
    %3 = tpu.matmul %0, %2, %cst {dimension_numbers = #tpu.dot_dimension_numbers<[1], [0], [0], [1], [0, 0, 1, 1], [], []>} : vector<16x256xbf16>, vector<256x256xbf16>, vector<16x256xf32> -> vector<16x256xf32>
    %c0_4 = arith.constant 0 : index
    %c0_5 = arith.constant 0 : index
    %4 = vector.load %arg5[%c0_4, %c0_5] : memref<1x256xf32, #tpu.memory_space<vmem>>, vector<1x256xf32>
    %5 = vector.broadcast %4 : vector<1x256xf32> to vector<16x256xf32>
    %6 = arith.addf %3, %5 : vector<16x256xf32>
    %cst_6 = arith.constant 0.000000e+00 : f32
    %7 = vector.broadcast %cst_6 : f32 to vector<16x256xf32>
    %8 = arith.maximumf %6, %7 : vector<16x256xf32>
    %cst_7 = arith.constant 0.000000e+00 : f32
    %9 = vector.broadcast %cst_7 : f32 to vector<16x256xf32>
    %10 = arith.minimumf %6, %9 : vector<16x256xf32>
    %11 = vector.broadcast %1 : f32 to vector<16x256xf32>
    %12 = arith.mulf %11, %10 : vector<16x256xf32>
    %13 = arith.addf %8, %12 : vector<16x256xf32>
    %14 = arith.truncf %13 : vector<16x256xf32> to vector<16x256xbf16>
    %c1 = arith.constant 1 : index
    %15 = memref.load %arg1[%c1] : memref<9xf32, #tpu.memory_space<smem>>
    %c0_8 = arith.constant 0 : index
    %c0_9 = arith.constant 0 : index
    %16 = vector.load %arg6[%c0_8, %c0_9] : memref<256x256xbf16, #tpu.memory_space<vmem>>, vector<256x256xbf16>
    %cst_10 = arith.constant dense<0.000000e+00> : vector<16x256xf32>
    %17 = tpu.matmul %14, %16, %cst_10 {dimension_numbers = #tpu.dot_dimension_numbers<[1], [0], [0], [1], [0, 0, 1, 1], [], []>} : vector<16x256xbf16>, vector<256x256xbf16>, vector<16x256xf32> -> vector<16x256xf32>
    %c0_11 = arith.constant 0 : index
    %c0_12 = arith.constant 0 : index
    %18 = vector.load %arg7[%c0_11, %c0_12] : memref<1x256xf32, #tpu.memory_space<vmem>>, vector<1x256xf32>
    %19 = vector.broadcast %18 : vector<1x256xf32> to vector<16x256xf32>
    %20 = arith.addf %17, %19 : vector<16x256xf32>
    %cst_13 = arith.constant 0.000000e+00 : f32
    %21 = vector.broadcast %cst_13 : f32 to vector<16x256xf32>
    %22 = arith.maximumf %20, %21 : vector<16x256xf32>
    %cst_14 = arith.constant 0.000000e+00 : f32
    %23 = vector.broadcast %cst_14 : f32 to vector<16x256xf32>
    %24 = arith.minimumf %20, %23 : vector<16x256xf32>
    %25 = vector.broadcast %15 : f32 to vector<16x256xf32>
    %26 = arith.mulf %25, %24 : vector<16x256xf32>
    %27 = arith.addf %22, %26 : vector<16x256xf32>
    %28 = arith.truncf %27 : vector<16x256xf32> to vector<16x256xbf16>
    %c2 = arith.constant 2 : index
    %29 = memref.load %arg1[%c2] : memref<9xf32, #tpu.memory_space<smem>>
    %c0_15 = arith.constant 0 : index
    %c0_16 = arith.constant 0 : index
    %30 = vector.load %arg8[%c0_15, %c0_16] : memref<256x64xbf16, #tpu.memory_space<vmem>>, vector<256x64xbf16>
    %cst_17 = arith.constant dense<0.000000e+00> : vector<16x64xf32>
    %31 = tpu.matmul %28, %30, %cst_17 {dimension_numbers = #tpu.dot_dimension_numbers<[1], [0], [0], [1], [0, 0, 1, 1], [], []>} : vector<16x256xbf16>, vector<256x64xbf16>, vector<16x64xf32> -> vector<16x64xf32>
    %c0_18 = arith.constant 0 : index
    %c0_19 = arith.constant 0 : index
    %32 = vector.load %arg9[%c0_18, %c0_19] : memref<1x64xf32, #tpu.memory_space<vmem>>, vector<1x64xf32>
    %33 = vector.broadcast %32 : vector<1x64xf32> to vector<16x64xf32>
    %34 = arith.addf %31, %33 : vector<16x64xf32>
    %cst_20 = arith.constant 0.000000e+00 : f32
    %35 = vector.broadcast %cst_20 : f32 to vector<16x64xf32>
    %36 = arith.maximumf %34, %35 : vector<16x64xf32>
    %cst_21 = arith.constant 0.000000e+00 : f32
    %37 = vector.broadcast %cst_21 : f32 to vector<16x64xf32>
    %38 = arith.minimumf %34, %37 : vector<16x64xf32>
    %39 = vector.broadcast %29 : f32 to vector<16x64xf32>
    %40 = arith.mulf %39, %38 : vector<16x64xf32>
    %41 = arith.addf %36, %40 : vector<16x64xf32>
    %42 = arith.truncf %41 : vector<16x64xf32> to vector<16x64xbf16>
    %c0_22 = arith.constant 0 : index
    %c0_23 = arith.constant 0 : index
    %43 = vector.load %arg3[%c0_22, %c0_23] : memref<16x56xbf16, #tpu.memory_space<vmem>>, vector<16x56xbf16>
    %c3 = arith.constant 3 : index
    %44 = memref.load %arg1[%c3] : memref<9xf32, #tpu.memory_space<smem>>
    %c0_24 = arith.constant 0 : index
    %c0_25 = arith.constant 0 : index
    %45 = vector.load %arg10[%c0_24, %c0_25] : memref<56x128xbf16, #tpu.memory_space<vmem>>, vector<56x128xbf16>
    %cst_26 = arith.constant dense<0.000000e+00> : vector<16x128xf32>
    %46 = tpu.matmul %43, %45, %cst_26 {dimension_numbers = #tpu.dot_dimension_numbers<[1], [0], [0], [1], [0, 0, 1, 1], [], []>} : vector<16x56xbf16>, vector<56x128xbf16>, vector<16x128xf32> -> vector<16x128xf32>
    %c0_27 = arith.constant 0 : index
    %c0_28 = arith.constant 0 : index
    %47 = vector.load %arg11[%c0_27, %c0_28] : memref<1x128xf32, #tpu.memory_space<vmem>>, vector<1x128xf32>
    %48 = vector.broadcast %47 : vector<1x128xf32> to vector<16x128xf32>
    %49 = arith.addf %46, %48 : vector<16x128xf32>
    %cst_29 = arith.constant 0.000000e+00 : f32
    %50 = vector.broadcast %cst_29 : f32 to vector<16x128xf32>
    %51 = arith.maximumf %49, %50 : vector<16x128xf32>
    %cst_30 = arith.constant 0.000000e+00 : f32
    %52 = vector.broadcast %cst_30 : f32 to vector<16x128xf32>
    %53 = arith.minimumf %49, %52 : vector<16x128xf32>
    %54 = vector.broadcast %44 : f32 to vector<16x128xf32>
    %55 = arith.mulf %54, %53 : vector<16x128xf32>
    %56 = arith.addf %51, %55 : vector<16x128xf32>
    %57 = arith.truncf %56 : vector<16x128xf32> to vector<16x128xbf16>
    %c4 = arith.constant 4 : index
    %58 = memref.load %arg1[%c4] : memref<9xf32, #tpu.memory_space<smem>>
    %c0_31 = arith.constant 0 : index
    %c0_32 = arith.constant 0 : index
    %59 = vector.load %arg12[%c0_31, %c0_32] : memref<128x128xbf16, #tpu.memory_space<vmem>>, vector<128x128xbf16>
    %cst_33 = arith.constant dense<0.000000e+00> : vector<16x128xf32>
    %60 = tpu.matmul %57, %59, %cst_33 {dimension_numbers = #tpu.dot_dimension_numbers<[1], [0], [0], [1], [0, 0, 1, 1], [], []>} : vector<16x128xbf16>, vector<128x128xbf16>, vector<16x128xf32> -> vector<16x128xf32>
    %c0_34 = arith.constant 0 : index
    %c0_35 = arith.constant 0 : index
    %61 = vector.load %arg13[%c0_34, %c0_35] : memref<1x128xf32, #tpu.memory_space<vmem>>, vector<1x128xf32>
    %62 = vector.broadcast %61 : vector<1x128xf32> to vector<16x128xf32>
    %63 = arith.addf %60, %62 : vector<16x128xf32>
    %cst_36 = arith.constant 0.000000e+00 : f32
    %64 = vector.broadcast %cst_36 : f32 to vector<16x128xf32>
    %65 = arith.maximumf %63, %64 : vector<16x128xf32>
    %cst_37 = arith.constant 0.000000e+00 : f32
    %66 = vector.broadcast %cst_37 : f32 to vector<16x128xf32>
    %67 = arith.minimumf %63, %66 : vector<16x128xf32>
    %68 = vector.broadcast %58 : f32 to vector<16x128xf32>
    %69 = arith.mulf %68, %67 : vector<16x128xf32>
    %70 = arith.addf %65, %69 : vector<16x128xf32>
    %71 = arith.truncf %70 : vector<16x128xf32> to vector<16x128xbf16>
    %c5 = arith.constant 5 : index
    %72 = memref.load %arg1[%c5] : memref<9xf32, #tpu.memory_space<smem>>
    %c0_38 = arith.constant 0 : index
    %c0_39 = arith.constant 0 : index
    %73 = vector.load %arg14[%c0_38, %c0_39] : memref<128x64xbf16, #tpu.memory_space<vmem>>, vector<128x64xbf16>
    %cst_40 = arith.constant dense<0.000000e+00> : vector<16x64xf32>
    %74 = tpu.matmul %71, %73, %cst_40 {dimension_numbers = #tpu.dot_dimension_numbers<[1], [0], [0], [1], [0, 0, 1, 1], [], []>} : vector<16x128xbf16>, vector<128x64xbf16>, vector<16x64xf32> -> vector<16x64xf32>
    %c0_41 = arith.constant 0 : index
    %c0_42 = arith.constant 0 : index
    %75 = vector.load %arg15[%c0_41, %c0_42] : memref<1x64xf32, #tpu.memory_space<vmem>>, vector<1x64xf32>
    %76 = vector.broadcast %75 : vector<1x64xf32> to vector<16x64xf32>
    %77 = arith.addf %74, %76 : vector<16x64xf32>
    %cst_43 = arith.constant 0.000000e+00 : f32
    %78 = vector.broadcast %cst_43 : f32 to vector<16x64xf32>
    %79 = arith.maximumf %77, %78 : vector<16x64xf32>
    %cst_44 = arith.constant 0.000000e+00 : f32
    %80 = vector.broadcast %cst_44 : f32 to vector<16x64xf32>
    %81 = arith.minimumf %77, %80 : vector<16x64xf32>
    %82 = vector.broadcast %72 : f32 to vector<16x64xf32>
    %83 = arith.mulf %82, %81 : vector<16x64xf32>
    %84 = arith.addf %79, %83 : vector<16x64xf32>
    %85 = arith.truncf %84 : vector<16x64xf32> to vector<16x64xbf16>
    %c0_45 = arith.constant 0 : index
    %c0_46 = arith.constant 0 : index
    %86 = vector.load %arg25[%c0_45, %c0_46] : memref<16x128xbf16, #tpu.memory_space<vmem>>, vector<16x64xbf16>
    tpu.vector_store %arg25[%c0_45, %c0_46], %42 {strides = array<i32>} : memref<16x128xbf16, #tpu.memory_space<vmem>>, vector<16x64xbf16>,
    %c0_47 = arith.constant 0 : index
    %c64 = arith.constant 64 : index
    %87 = vector.load %arg25[%c0_47, %c64] : memref<16x128xbf16, #tpu.memory_space<vmem>>, vector<16x64xbf16>
    tpu.vector_store %arg25[%c0_47, %c64], %85 {strides = array<i32>} : memref<16x128xbf16, #tpu.memory_space<vmem>>, vector<16x64xbf16>,
    %c0_48 = arith.constant 0 : index
    %c0_49 = arith.constant 0 : index
    %88 = vector.load %arg25[%c0_48, %c0_49] : memref<16x128xbf16, #tpu.memory_space<vmem>>, vector<16x128xbf16>
    %c6 = arith.constant 6 : index
    %89 = memref.load %arg1[%c6] : memref<9xf32, #tpu.memory_space<smem>>
    %c0_50 = arith.constant 0 : index
    %c0_51 = arith.constant 0 : index
    %90 = vector.load %arg16[%c0_50, %c0_51] : memref<128x128xbf16, #tpu.memory_space<vmem>>, vector<128x128xbf16>
    %cst_52 = arith.constant dense<0.000000e+00> : vector<16x128xf32>
    %91 = tpu.matmul %88, %90, %cst_52 {dimension_numbers = #tpu.dot_dimension_numbers<[1], [0], [0], [1], [0, 0, 1, 1], [], []>} : vector<16x128xbf16>, vector<128x128xbf16>, vector<16x128xf32> -> vector<16x128xf32>
    %c0_53 = arith.constant 0 : index
    %c0_54 = arith.constant 0 : index
    %92 = vector.load %arg17[%c0_53, %c0_54] : memref<1x128xf32, #tpu.memory_space<vmem>>, vector<1x128xf32>
    %93 = vector.broadcast %92 : vector<1x128xf32> to vector<16x128xf32>
    %94 = arith.addf %91, %93 : vector<16x128xf32>
    %cst_55 = arith.constant 0.000000e+00 : f32
    %95 = vector.broadcast %cst_55 : f32 to vector<16x128xf32>
    %96 = arith.maximumf %94, %95 : vector<16x128xf32>
    %cst_56 = arith.constant 0.000000e+00 : f32
    %97 = vector.broadcast %cst_56 : f32 to vector<16x128xf32>
    %98 = arith.minimumf %94, %97 : vector<16x128xf32>
    %99 = vector.broadcast %89 : f32 to vector<16x128xf32>
    %100 = arith.mulf %99, %98 : vector<16x128xf32>
    %101 = arith.addf %96, %100 : vector<16x128xf32>
    %102 = arith.truncf %101 : vector<16x128xf32> to vector<16x128xbf16>
    %c7 = arith.constant 7 : index
    %103 = memref.load %arg1[%c7] : memref<9xf32, #tpu.memory_space<smem>>
    %c0_57 = arith.constant 0 : index
    %c0_58 = arith.constant 0 : index
    %104 = vector.load %arg18[%c0_57, %c0_58] : memref<128x128xbf16, #tpu.memory_space<vmem>>, vector<128x128xbf16>
    %cst_59 = arith.constant dense<0.000000e+00> : vector<16x128xf32>
    %105 = tpu.matmul %102, %104, %cst_59 {dimension_numbers = #tpu.dot_dimension_numbers<[1], [0], [0], [1], [0, 0, 1, 1], [], []>} : vector<16x128xbf16>, vector<128x128xbf16>, vector<16x128xf32> -> vector<16x128xf32>
    %c0_60 = arith.constant 0 : index
    %c0_61 = arith.constant 0 : index
    %106 = vector.load %arg19[%c0_60, %c0_61] : memref<1x128xf32, #tpu.memory_space<vmem>>, vector<1x128xf32>
    %107 = vector.broadcast %106 : vector<1x128xf32> to vector<16x128xf32>
    %108 = arith.addf %105, %107 : vector<16x128xf32>
    %cst_62 = arith.constant 0.000000e+00 : f32
    %109 = vector.broadcast %cst_62 : f32 to vector<16x128xf32>
    %110 = arith.maximumf %108, %109 : vector<16x128xf32>
    %cst_63 = arith.constant 0.000000e+00 : f32
    %111 = vector.broadcast %cst_63 : f32 to vector<16x128xf32>
    %112 = arith.minimumf %108, %111 : vector<16x128xf32>
    %113 = vector.broadcast %103 : f32 to vector<16x128xf32>
    %114 = arith.mulf %113, %112 : vector<16x128xf32>
    %115 = arith.addf %110, %114 : vector<16x128xf32>
    %116 = arith.truncf %115 : vector<16x128xf32> to vector<16x128xbf16>
    %c8 = arith.constant 8 : index
    %117 = memref.load %arg1[%c8] : memref<9xf32, #tpu.memory_space<smem>>
    %c0_64 = arith.constant 0 : index
    %c0_65 = arith.constant 0 : index
    %118 = vector.load %arg20[%c0_64, %c0_65] : memref<128x64xbf16, #tpu.memory_space<vmem>>, vector<128x64xbf16>
    %cst_66 = arith.constant dense<0.000000e+00> : vector<16x64xf32>
    %119 = tpu.matmul %116, %118, %cst_66 {dimension_numbers = #tpu.dot_dimension_numbers<[1], [0], [0], [1], [0, 0, 1, 1], [], []>} : vector<16x128xbf16>, vector<128x64xbf16>, vector<16x64xf32> -> vector<16x64xf32>
    %c0_67 = arith.constant 0 : index
    %c0_68 = arith.constant 0 : index
    %120 = vector.load %arg21[%c0_67, %c0_68] : memref<1x64xf32, #tpu.memory_space<vmem>>, vector<1x64xf32>
    %121 = vector.broadcast %120 : vector<1x64xf32> to vector<16x64xf32>
    %122 = arith.addf %119, %121 : vector<16x64xf32>
    %cst_69 = arith.constant 0.000000e+00 : f32
    %123 = vector.broadcast %cst_69 : f32 to vector<16x64xf32>
    %124 = arith.maximumf %122, %123 : vector<16x64xf32>
    %cst_70 = arith.constant 0.000000e+00 : f32
    %125 = vector.broadcast %cst_70 : f32 to vector<16x64xf32>
    %126 = arith.minimumf %122, %125 : vector<16x64xf32>
    %127 = vector.broadcast %117 : f32 to vector<16x64xf32>
    %128 = arith.mulf %127, %126 : vector<16x64xf32>
    %129 = arith.addf %124, %128 : vector<16x64xf32>
    %130 = arith.truncf %129 : vector<16x64xf32> to vector<16x64xbf16>
    %131 = arith.extf %130 : vector<16x64xbf16> to vector<16x64xf32>
    %c0_71 = arith.constant 0 : index
    %c0_72 = arith.constant 0 : index
    %132 = vector.load %arg22[%c0_71, %c0_72] : memref<1x64xf32, #tpu.memory_space<vmem>>, vector<1x64xf32>
    %133 = vector.broadcast %132 : vector<1x64xf32> to vector<16x64xf32>
    %134 = arith.mulf %131, %133 : vector<16x64xf32>
    %cst_73 = arith.constant dense<0.000000e+00> : vector<16xf32>
    %135 = vector.multi_reduction <add>, %134, %cst_73 [1] : vector<16x64xf32> to vector<16xf32>
    %136 = vector.shape_cast %135 : vector<16xf32> to vector<16x1xf32>
    %c0_74 = arith.constant 0 : index
    %c0_75 = arith.constant 0 : index
    %137 = vector.load %arg23[%c0_74, %c0_75] : memref<1x1xf32, #tpu.memory_space<vmem>>, vector<1x1xf32>
    %138 = vector.broadcast %137 : vector<1x1xf32> to vector<16x1xf32>
    %139 = arith.addf %136, %138 : vector<16x1xf32>
    %c0_76 = arith.constant 0 : index
    %c0_77 = arith.constant 0 : index
    %140 = vector.load %arg24[%c0_76, %c0_77] : memref<16x1xf32, #tpu.memory_space<vmem>>, vector<16x1xf32>
    tpu.vector_store %arg24[%c0_76, %c0_77], %139 {strides = array<i32>} : memref<16x1xf32, #tpu.memory_space<vmem>>, vector<16x1xf32>,
    return
  }
  func.func @transform_0(%arg0: i32, %arg1: memref<9xf32, #tpu.memory_space<smem>>) -> (i32, i32) {
    %c0_i32 = arith.constant 0 : i32
    %c0_i32_0 = arith.constant 0 : i32
    return %arg0, %c0_i32 : i32, i32
  }
  func.func @transform_1(%arg0: i32, %arg1: memref<9xf32, #tpu.memory_space<smem>>) -> (i32, i32) {
    %c0_i32 = arith.constant 0 : i32
    %c0_i32_0 = arith.constant 0 : i32
    return %arg0, %c0_i32 : i32, i32
  }
  func.func @transform_2(%arg0: i32, %arg1: memref<9xf32, #tpu.memory_space<smem>>) -> (i32, i32) {
    %c0_i32 = arith.constant 0 : i32
    %c0_i32_0 = arith.constant 0 : i32
    %c0_i32_1 = arith.constant 0 : i32
    return %c0_i32, %c0_i32_0 : i32, i32
  }
  func.func @transform_3(%arg0: i32, %arg1: memref<9xf32, #tpu.memory_space<smem>>) -> (i32, i32) {
    %c0_i32 = arith.constant 0 : i32
    %c0_i32_0 = arith.constant 0 : i32
    %c0_i32_1 = arith.constant 0 : i32
    return %c0_i32, %c0_i32_0 : i32, i32
  }
  func.func @transform_4(%arg0: i32, %arg1: memref<9xf32, #tpu.memory_space<smem>>) -> (i32, i32) {
    %c0_i32 = arith.constant 0 : i32
    %c0_i32_0 = arith.constant 0 : i32
    %c0_i32_1 = arith.constant 0 : i32
    return %c0_i32, %c0_i32_0 : i32, i32
  }
  func.func @transform_5(%arg0: i32, %arg1: memref<9xf32, #tpu.memory_space<smem>>) -> (i32, i32) {
    %c0_i32 = arith.constant 0 : i32
    %c0_i32_0 = arith.constant 0 : i32
    %c0_i32_1 = arith.constant 0 : i32
    return %c0_i32, %c0_i32_0 : i32, i32
  }
  func.func @transform_6(%arg0: i32, %arg1: memref<9xf32, #tpu.memory_space<smem>>) -> (i32, i32) {
    %c0_i32 = arith.constant 0 : i32
    %c0_i32_0 = arith.constant 0 : i32
    %c0_i32_1 = arith.constant 0 : i32
    return %c0_i32, %c0_i32_0 : i32, i32
  }
  func.func @transform_7(%arg0: i32, %arg1: memref<9xf32, #tpu.memory_space<smem>>) -> (i32, i32) {
    %c0_i32 = arith.constant 0 : i32
    %c0_i32_0 = arith.constant 0 : i32
    %c0_i32_1 = arith.constant 0 : i32
    return %c0_i32, %c0_i32_0 : i32, i32
  }
  func.func @transform_8(%arg0: i32, %arg1: memref<9xf32, #tpu.memory_space<smem>>) -> (i32, i32) {
    %c0_i32 = arith.constant 0 : i32
    %c0_i32_0 = arith.constant 0 : i32
    %c0_i32_1 = arith.constant 0 : i32
    return %c0_i32, %c0_i32_0 : i32, i32
  }
  func.func @transform_9(%arg0: i32, %arg1: memref<9xf32, #tpu.memory_space<smem>>) -> (i32, i32) {
    %c0_i32 = arith.constant 0 : i32
    %c0_i32_0 = arith.constant 0 : i32
    %c0_i32_1 = arith.constant 0 : i32
    return %c0_i32, %c0_i32_0 : i32, i32
  }
  func.func @transform_10(%arg0: i32, %arg1: memref<9xf32, #tpu.memory_space<smem>>) -> (i32, i32) {
    %c0_i32 = arith.constant 0 : i32
    %c0_i32_0 = arith.constant 0 : i32
    %c0_i32_1 = arith.constant 0 : i32
    return %c0_i32, %c0_i32_0 : i32, i32
  }
  func.func @transform_11(%arg0: i32, %arg1: memref<9xf32, #tpu.memory_space<smem>>) -> (i32, i32) {
    %c0_i32 = arith.constant 0 : i32
    %c0_i32_0 = arith.constant 0 : i32
    %c0_i32_1 = arith.constant 0 : i32
    return %c0_i32, %c0_i32_0 : i32, i32
  }
  func.func @transform_12(%arg0: i32, %arg1: memref<9xf32, #tpu.memory_space<smem>>) -> (i32, i32) {
    %c0_i32 = arith.constant 0 : i32
    %c0_i32_0 = arith.constant 0 : i32
    %c0_i32_1 = arith.constant 0 : i32
    return %c0_i32, %c0_i32_0 : i32, i32
  }
  func.func @transform_13(%arg0: i32, %arg1: memref<9xf32, #tpu.memory_space<smem>>) -> (i32, i32) {
    %c0_i32 = arith.constant 0 : i32
    %c0_i32_0 = arith.constant 0 : i32
    %c0_i32_1 = arith.constant 0 : i32
    return %c0_i32, %c0_i32_0 : i32, i32
  }
  func.func @transform_14(%arg0: i32, %arg1: memref<9xf32, #tpu.memory_space<smem>>) -> (i32, i32) {
    %c0_i32 = arith.constant 0 : i32
    %c0_i32_0 = arith.constant 0 : i32
    %c0_i32_1 = arith.constant 0 : i32
    return %c0_i32, %c0_i32_0 : i32, i32
  }
  func.func @transform_15(%arg0: i32, %arg1: memref<9xf32, #tpu.memory_space<smem>>) -> (i32, i32) {
    %c0_i32 = arith.constant 0 : i32
    %c0_i32_0 = arith.constant 0 : i32
    %c0_i32_1 = arith.constant 0 : i32
    return %c0_i32, %c0_i32_0 : i32, i32
  }
  func.func @transform_16(%arg0: i32, %arg1: memref<9xf32, #tpu.memory_space<smem>>) -> (i32, i32) {
    %c0_i32 = arith.constant 0 : i32
    %c0_i32_0 = arith.constant 0 : i32
    %c0_i32_1 = arith.constant 0 : i32
    return %c0_i32, %c0_i32_0 : i32, i32
  }
  func.func @transform_17(%arg0: i32, %arg1: memref<9xf32, #tpu.memory_space<smem>>) -> (i32, i32) {
    %c0_i32 = arith.constant 0 : i32
    %c0_i32_0 = arith.constant 0 : i32
    %c0_i32_1 = arith.constant 0 : i32
    return %c0_i32, %c0_i32_0 : i32, i32
  }
  func.func @transform_18(%arg0: i32, %arg1: memref<9xf32, #tpu.memory_space<smem>>) -> (i32, i32) {
    %c0_i32 = arith.constant 0 : i32
    %c0_i32_0 = arith.constant 0 : i32
    %c0_i32_1 = arith.constant 0 : i32
    return %c0_i32, %c0_i32_0 : i32, i32
  }
  func.func @transform_19(%arg0: i32, %arg1: memref<9xf32, #tpu.memory_space<smem>>) -> (i32, i32) {
    %c0_i32 = arith.constant 0 : i32
    %c0_i32_0 = arith.constant 0 : i32
    %c0_i32_1 = arith.constant 0 : i32
    return %c0_i32, %c0_i32_0 : i32, i32
  }
  func.func @transform_20(%arg0: i32, %arg1: memref<9xf32, #tpu.memory_space<smem>>) -> (i32, i32) {
    %c0_i32 = arith.constant 0 : i32
    %c0_i32_0 = arith.constant 0 : i32
    %c0_i32_1 = arith.constant 0 : i32
    return %c0_i32, %c0_i32_0 : i32, i32
  }
  func.func @transform_21(%arg0: i32, %arg1: memref<9xf32, #tpu.memory_space<smem>>) -> (i32, i32) {
    %c0_i32 = arith.constant 0 : i32
    %c0_i32_0 = arith.constant 0 : i32
    %c0_i32_1 = arith.constant 0 : i32
    return %c0_i32, %c0_i32_0 : i32, i32
  }
  func.func @transform_22(%arg0: i32, %arg1: memref<9xf32, #tpu.memory_space<smem>>) -> (i32, i32) {
    %c0_i32 = arith.constant 0 : i32
    %c0_i32_0 = arith.constant 0 : i32
    return %arg0, %c0_i32 : i32, i32
  }
}

</mosaic_0001>

<bundles_post_ra>
// kernel: tpu_custom_call.1
= control target key start
LH: loop header
LB: loop body
LE: loop exit
PB: predicated region body
PF: predicated region fallthrough
CT: control target
= control target key end

     0   :  { %s3116_s0 = inlined_call_operand.vmem [shape: f32[9], index: 0, kind: input, shape index: {}]   ;;  %s3117_s1 = inlined_call_operand.hbm [shape: bf16[16,256], index: 1, kind: input, shape index: {}]   ;;  %s3118_s2 = inlined_call_operand.hbm [shape: bf16[16,56], index: 2, kind: input, shape index: {}]   ;;  %s3119_s3 = inlined_call_operand.vmem [shape: bf16[256,256], index: 3, kind: input, shape index: {}]   ;;  %s3120_s4 = inlined_call_operand.hbm [shape: f32[1,256], index: 4, kind: input, shape index: {}]   ;;  %s3121_s5 = inlined_call_operand.hbm [shape: bf16[256,256], index: 5, kind: input, shape index: {}]   ;;  %s3122_s6 = inlined_call_operand.hbm [shape: f32[1,256], index: 6, kind: input, shape index: {}]   ;;  %s3123_s7 = inlined_call_operand.vmem [shape: bf16[256,64], index: 7, kind: input, shape index: {}]   ;;  %s3124_s8 = inlined_call_operand.hbm [shape: f32[1,64], index: 8, kind: input, shape index: {}]   ;;  %s3125_s9 = inlined_call_operand.hbm [shape: bf16[56,128], index: 9, kind: input, shape index: {}]   ;;  %s3126_s10 = inlined_call_operand.hbm [shape: f32[1,128], index: 10, kind: input, shape index: {}]   ;;  %s3127_s11 = inlined_call_operand.vmem [shape: bf16[128,128], index: 11, kind: input, shape index: {}]   ;;  %s3128_s12 = inlined_call_operand.hbm [shape: f32[1,128], index: 12, kind: input, shape index: {}]   ;;  %s3129_s13 = inlined_call_operand.vmem [shape: bf16[128,64], index: 13, kind: input, shape index: {}]   ;;  %s3130_s14 = inlined_call_operand.hbm [shape: f32[1,64], index: 14, kind: input, shape index: {}]   ;;  %s3131_s15 = inlined_call_operand.hbm [shape: bf16[128,128], index: 15, kind: input, shape index: {}]   ;;  %s3132_s16 = inlined_call_operand.hbm [shape: f32[1,128], index: 16, kind: input, shape index: {}]   ;;  %s3133_s17 = inlined_call_operand.hbm [shape: bf16[128,128], index: 17, kind: input, shape index: {}]   ;;  %s3134_s18 = inlined_call_operand.hbm [shape: f32[1,128], index: 18, kind: input, shape index: {}]   ;;  %s3135_s19 = inlined_call_operand.vmem [shape: bf16[128,64], index: 19, kind: input, shape index: {}]   ;;  %s3136_s20 = inlined_call_operand.vmem [shape: f32[1,64], index: 20, kind: input, shape index: {}]   ;;  %s3137_s21 = inlined_call_operand.vmem [shape: f32[1,64], index: 21, kind: input, shape index: {}]   ;;  %s3138_s23 = inlined_call_operand.vmem [shape: f32[16,1], index: 23, kind: output, shape index: {}]   ;;  %s3139_s22 = inlined_call_operand.<no memory space> [shape: f32[1,1], index: 22, kind: input, shape index: {}]  }
   0x1   :  { %3143 = sst [smem:[#allocation37_spill]] %s3116_s0  ;;  %v32_v0 = vstv %s3139_s22 }
   0x2   :  { %3144 = sst [smem:[#allocation38_spill]] %s3117_s1  ;;  %33 = vst [vmem:[#allocation5] sm:$0x1] %v32_v0 }
   0x3   :  { %3145 = sst [smem:[#allocation39_spill]] %s3118_s2 }
   0x4   :  { %3146 = sst [smem:[#allocation40_spill]] %s3119_s3 }
   0x5   :  { %3147 = sst [smem:[#allocation41_spill]] %s3120_s4 }
   0x6   :  { %3148 = sst [smem:[#allocation42_spill]] %s3121_s5 }
   0x7   :  { %3149 = sst [smem:[#allocation43_spill]] %s3122_s6 }
   0x8   :  { %3150 = sst [smem:[#allocation44_spill]] %s3123_s7 }
   0x9   :  { %3151 = sst [smem:[#allocation45_spill]] %s3129_s13 }
   0xa   :  { %s3152_s24 = sld [smem:[#allocation37_spill]] }
  0x10   :  { %s28_s13 = sshll.u32 %s3152_s24, 4  ;;  %s29_s13 = int_to_ptr.vmem [resolvable:$true] %s28_s13 }
  0x11   :  { %s2299_s1 = scalar_lea.vmem %s29_s13, 16  ;;  %p2304_p1 = scmp.lt.s32.totalorder %s29_s13, %s29_s13 }
  0x12   :  { %p2300_p0 = scmp.ne.s32.totalorder %s29_s13, %s2299_s1  ;;  %p2305_p2 = scmp.lt.s32.totalorder %s2299_s1, %s2299_s1 }
  0x14   :  { %p2306_p3 = por %p2305_p2, %p2304_p1 }
  0x16   :  { %p2307_p4 = pnand %p2306_p3, %p2300_p0 }
  0x18   :  { %2310 = shalt.err (!%p2307_p4)  }
  0x19   :  { %s2609_s26 = smov [#allocation4]  }
  0x1a   :  { %31 = dma.vmem_to_smem %s29_s13, 16, %s2609_s26, [#allocation3] }
  0x1b   :  { %2591 = dma.done.wait [#allocation3], 16 }
  0x1c   :  { %2592 = vsyncadd [#allocation3], 4294967280 }
  0x1d   :  { %35 = sfence }
  0x1e   :  { %36 = vsyncpa [#allocation7], 0 }
  0x1f   :  { %37 = vsyncpa [#allocation9], 0 }
  0x20   :  { %38 = vsyncpa [#allocation12], 0 }
  0x21   :  { %39 = vsyncpa [#allocation15], 0 }
  0x22   :  { %40 = vsyncpa [#allocation18], 0 }
  0x23   :  { %41 = vsyncpa [#allocation21], 0 }
  0x24   :  { %42 = vsyncpa [#allocation24], 0 }
  0x25   :  { %43 = vsyncpa [#allocation27], 0  ;;  %s2610_s22 = smov [#allocation8]  }
  0x26   :  { %s61_s2 = sshll.u32 %s2610_s22, 4  ;;  %s62_s2 = int_to_ptr.vmem [resolvable:$true] %s61_s2 }
  0x27   :  { %s2319_s6 = scalar_lea.vmem %s62_s2, 128  ;;  %p2324_p6 = scmp.lt.s32.totalorder %s62_s2, %s62_s2 }
  0x28   :  { %p2320_p5 = scmp.ne.s32.totalorder %s62_s2, %s2319_s6  ;;  %p2325_p7 = scmp.lt.s32.totalorder %s2319_s6, %s2319_s6 }
  0x2a   :  { %p2326_p8 = por %p2325_p7, %p2324_p6 }
  0x2c   :  { %p2327_p9 = pnand %p2326_p8, %p2320_p5 }
  0x2e   :  { %2330 = shalt.err (!%p2327_p9)
}
  0x2f   :  { %s2611_s13 = smov 64   ;;  %s2612_s27 = smov 4  }
  0x30   :  { %s3153_s29 = sld [smem:[#allocation39_spill]]  ;;  %s2613_s3 = smov [#allocation11]  }
  0x31   :  { %s85_s0 = sshll.u32 %s2613_s3, 4  ;;  %s2614_s4 = smov [#allocation14]   ;;  %s86_s0 = int_to_ptr.vmem [resolvable:$true] %s85_s0 }
  0x32   :  { %s110_s30 = sshll.u32 %s2614_s4, 4  ;;  %s2339_s24 = scalar_lea.vmem %s86_s0, 4096  ;;  %s111_s30 = int_to_ptr.vmem [resolvable:$true] %s110_s30 }
  0x33   :  { %p2340_p10 = scmp.ne.s32.totalorder %s86_s0, %s2339_s24  ;;  %p2344_p11 = scmp.lt.s32.totalorder %s86_s0, %s86_s0 }
  0x34   :  { %p2345_p12 = scmp.lt.s32.totalorder %s2339_s24, %s2339_s24 }
  0x36   :  { %67 = dma.hbm_to_vmem [thread:$0]  %s3153_s29, 128, %s62_s2, [#allocation9], %s2611_s13, %s2611_s13, %s2612_s27  }
  0x37   :  { %p2346_p13 = por %p2345_p12, %p2344_p11 }
  0x39   :  { %p2347_p0 = pnand %p2346_p13, %p2340_p10 }
  0x3b   :  { %2350 = shalt.err (!%p2347_p0)
}
  0x3c   :  { %s2615_s25 = smov 128   ;;  %s2616_s5 = smov 8  }
  0x3d   :  { %s3154_s22 = sld [smem:[#allocation42_spill]]  ;;  %s2359_s2 = scalar_lea.vmem %s111_s30, 16 }
  0x3e   :  { %p2360_p1 = scmp.ne.s32.totalorder %s111_s30, %s2359_s2  ;;  %s2363_s6 = scalar_lea.vmem %s111_s30, 32 }
  0x3f   :  { %p2364_p2 = scmp.lt.s32.totalorder %s111_s30, %s111_s30  ;;  %p2365_p3 = scmp.lt.s32.totalorder %s2363_s6, %s2359_s2 }
  0x41   :  { %p2366_p4 = por %p2365_p3, %p2364_p2 }
  0x43   :  { %91 = dma.hbm_to_vmem [thread:$0]  %s3154_s22, 4096, %s86_s0, [#allocation12], %s2615_s25, %s2615_s25, %s2616_s5  }
  0x44   :  { %p2367_p5 = pnand %p2366_p4, %p2360_p1 }
  0x46   :  { %2370 = shalt.err (!%p2367_p5)
}
  0x47   :  { %113 = dma.hbm_to_vmem [thread:$0]  %s3124_s8, 16, %s111_s30, [#allocation15]  }
  0x48   :  { %s2617_s29 = smov [#allocation17]   ;;  %s2618_s4 = smov [#allocation20]  }
  0x49   :  { %s132_s3 = sshll.u32 %s2617_s29, 4  ;;  %s156_s24 = sshll.u32 %s2618_s4, 4  ;;  %s133_s3 = int_to_ptr.vmem [resolvable:$true] %s132_s3  ;;  %s157_s24 = int_to_ptr.vmem [resolvable:$true] %s156_s24 }
  0x4a   :  { %s2379_s1 = scalar_lea.vmem %s133_s3, 16  ;;  %s2383_s0 = scalar_lea.vmem %s133_s3, 32 }
  0x4b   :  { %p2380_p6 = scmp.ne.s32.totalorder %s133_s3, %s2379_s1  ;;  %p2384_p7 = scmp.lt.s32.totalorder %s133_s3, %s133_s3 }
  0x4c   :  { %p2385_p8 = scmp.lt.s32.totalorder %s2383_s0, %s2379_s1 }
  0x4e   :  { %p2386_p9 = por %p2385_p8, %p2384_p7 }
  0x50   :  { %p2387_p10 = pnand %p2386_p9, %p2380_p6 }
  0x52   :  { %2390 = shalt.err (!%p2387_p10)
}
  0x53   :  { %135 = dma.hbm_to_vmem [thread:$0]  %s3126_s10, 16, %s133_s3, [#allocation18]  }
  0x54   :  { %s2399_s2 = scalar_lea.vmem %s157_s24, 16  ;;  %s2403_s8 = scalar_lea.vmem %s157_s24, 32 }
  0x55   :  { %p2400_p11 = scmp.ne.s32.totalorder %s157_s24, %s2399_s2  ;;  %p2404_p12 = scmp.lt.s32.totalorder %s157_s24, %s157_s24 }
  0x56   :  { %p2405_p13 = scmp.lt.s32.totalorder %s2403_s8, %s2399_s2 }
  0x58   :  { %p2406_p0 = por %p2405_p13, %p2404_p12 }
  0x5a   :  { %p2407_p1 = pnand %p2406_p0, %p2400_p11 }
  0x5c   :  { %2410 = shalt.err (!%p2407_p1)
}
  0x5d   :  { %159 = dma.hbm_to_vmem [thread:$0]  %s3130_s14, 16, %s157_s24, [#allocation21]  }
  0x5e   :  { %s2619_s7 = smov [#allocation23]   ;;  %s2620_s29 = smov [#allocation6]  }
  0x5f   :  { %s178_s28 = sshll.u32 %s2619_s7, 4  ;;  %s49_s4 = sshll.u32 %s2620_s29, 4  ;;  %s179_s28 = int_to_ptr.vmem [resolvable:$true] %s178_s28  ;;  %s50_s4 = int_to_ptr.vmem [resolvable:$true] %s49_s4 }
  0x60   :  { %s2419_s1 = scalar_lea.vmem %s179_s28, 16  ;;  %s2423_s10 = scalar_lea.vmem %s179_s28, 32 }
  0x61   :  { %p2420_p2 = scmp.ne.s32.totalorder %s179_s28, %s2419_s1  ;;  %p2424_p3 = scmp.lt.s32.totalorder %s179_s28, %s179_s28 }
  0x62   :  { %p2425_p4 = scmp.lt.s32.totalorder %s2423_s10, %s2419_s1 }
  0x64   :  { %p2426_p5 = por %p2425_p4, %p2424_p3 }
  0x66   :  { %p2427_p6 = pnand %p2426_p5, %p2420_p2 }
  0x68   :  { %2430 = shalt.err (!%p2427_p6)
}
  0x69   :  { %181 = dma.hbm_to_vmem [thread:$0]  %s3132_s16, 16, %s179_s28, [#allocation24]  }
  0x6a   :  { %s2439_s26 = scalar_lea.vmem %s50_s4, 256  ;;  %p2444_p8 = scmp.lt.s32.totalorder %s50_s4, %s50_s4 }
  0x6b   :  { %p2440_p7 = scmp.ne.s32.totalorder %s50_s4, %s2439_s26  ;;  %p2445_p9 = scmp.lt.s32.totalorder %s2439_s26, %s2439_s26 }
  0x6d   :  { %p2446_p10 = por %p2445_p9, %p2444_p8 }
  0x6f   :  { %p2447_p11 = pnand %p2446_p10, %p2440_p7 }
  0x71   :  { %2450 = shalt.err (!%p2447_p11)
}
  0x72   :  { %s3155_s22 = sld [smem:[#allocation38_spill]]  ;;  %s2621_s2 = smov [#allocation10]  }
  0x73   :  { %s76_s8 = sshll.u32 %s2621_s2, 4  ;;  %s2622_s30 = smov [#allocation13]   ;;  %s77_s8 = int_to_ptr.vmem [resolvable:$true] %s76_s8 }
  0x74   :  { %s98_s16 = sshll.u32 %s2622_s30, 4  ;;  %s2459_s6 = scalar_lea.vmem %s77_s8, 32  ;;  %s99_s16 = int_to_ptr.vmem [resolvable:$true] %s98_s16 }
  0x75   :  { %p2460_p12 = scmp.ne.s32.totalorder %s77_s8, %s2459_s6  ;;  %p2464_p13 = scmp.lt.s32.totalorder %s77_s8, %s77_s8 }
  0x76   :  { %p2465_p0 = scmp.lt.s32.totalorder %s2459_s6, %s2459_s6 }
  0x78   :  { %55 = dma.hbm_to_vmem [thread:$0]  %s3155_s22, 256, %s50_s4, [#allocation7], %s2615_s25, %s2615_s25, %s2616_s5  }
  0x79   :  { %p2466_p1 = por %p2465_p0, %p2464_p13 }
  0x7b   :  { %p2467_p2 = pnand %p2466_p1, %p2460_p12 }
  0x7d   :  { %2470 = shalt.err (!%p2467_p2)
}
  0x7e   :  { %s3156_s29 = sld [smem:[#allocation41_spill]]  ;;  %s2479_s1 = scalar_lea.vmem %s99_s16, 32 }
  0x7f   :  { %p2480_p3 = scmp.ne.s32.totalorder %s99_s16, %s2479_s1  ;;  %p2484_p4 = scmp.lt.s32.totalorder %s99_s16, %s99_s16 }
  0x80   :  { %p2485_p5 = scmp.lt.s32.totalorder %s2479_s1, %s2479_s1 }
  0x82   :  { %p2486_p6 = por %p2485_p5, %p2484_p4 }
  0x84   :  { %79 = dma.hbm_to_vmem [thread:$0]  %s3156_s29, 32, %s77_s8, [#allocation9]  }
  0x85   :  { %p2487_p7 = pnand %p2486_p6, %p2480_p3 }
  0x87   :  { %2490 = shalt.err (!%p2487_p7)
}
  0x88   :  { %s3157_s4 = sld [smem:[#allocation43_spill]]  ;;  %s2623_s10 = smov [#allocation16]  }
  0x89   :  { %s119_s3 = sshll.u32 %s2623_s10, 4  ;;  %s2624_s0 = smov [#allocation19]   ;;  %s120_s3 = int_to_ptr.vmem [resolvable:$true] %s119_s3 }
  0x8a   :  { %s144_s26 = sshll.u32 %s2624_s0, 4  ;;  %s2499_s14 = scalar_lea.vmem %s120_s3, 448  ;;  %s145_s26 = int_to_ptr.vmem [resolvable:$true] %s144_s26 }
  0x8b   :  { %p2500_p8 = scmp.ne.s32.totalorder %s120_s3, %s2499_s14  ;;  %p2504_p9 = scmp.lt.s32.totalorder %s120_s3, %s120_s3 }
  0x8c   :  { %p2505_p10 = scmp.lt.s32.totalorder %s2499_s14, %s2499_s14 }
  0x8e   :  { %101 = dma.hbm_to_vmem [thread:$0]  %s3157_s4, 32, %s99_s16, [#allocation12]  }
  0x8f   :  { %p2506_p11 = por %p2505_p10, %p2504_p9 }
  0x91   :  { %p2507_p12 = pnand %p2506_p11, %p2500_p8 }
  0x93   :  { %2510 = shalt.err (!%p2507_p12)
}
  0x94   :  { %125 = dma.hbm_to_vmem [thread:$0]  %s3125_s9, 448, %s120_s3, [#allocation15], %s2611_s13, %s2611_s13, %s2612_s27  }
  0x95   :  { %s2519_s2 = scalar_lea.vmem %s145_s26, 16  ;;  %s2523_s8 = scalar_lea.vmem %s145_s26, 32 }
  0x96   :  { %p2520_p13 = scmp.ne.s32.totalorder %s145_s26, %s2519_s2  ;;  %p2524_p0 = scmp.lt.s32.totalorder %s145_s26, %s145_s26 }
  0x97   :  { %p2525_p1 = scmp.lt.s32.totalorder %s2523_s8, %s2519_s2 }
  0x99   :  { %p2526_p2 = por %p2525_p1, %p2524_p0 }
  0x9b   :  { %p2527_p3 = pnand %p2526_p2, %p2520_p13 }
  0x9d   :  { %2530 = shalt.err (!%p2527_p3)
}
  0x9e   :  { %147 = dma.hbm_to_vmem [thread:$0]  %s3128_s12, 16, %s145_s26, [#allocation18]  }
  0x9f   :  { %s2625_s6 = smov [#allocation22]   ;;  %s2626_s28 = smov [#allocation25]  }
  0xa0   :  { %s165_s7 = sshll.u32 %s2625_s6, 4  ;;  %s187_s29 = sshll.u32 %s2626_s28, 4  ;;  %s166_s7 = int_to_ptr.vmem [resolvable:$true] %s165_s7  ;;  %s188_s29 = int_to_ptr.vmem [resolvable:$true] %s187_s29 }
  0xa1   :  { %s2539_s1 = scalar_lea.vmem %s166_s7, 1024  ;;  %p2544_p5 = scmp.lt.s32.totalorder %s166_s7, %s166_s7 }
  0xa2   :  { %p2540_p4 = scmp.ne.s32.totalorder %s166_s7, %s2539_s1  ;;  %p2545_p6 = scmp.lt.s32.totalorder %s2539_s1, %s2539_s1 }
  0xa4   :  { %p2546_p7 = por %p2545_p6, %p2544_p5 }
  0xa6   :  { %p2547_p8 = pnand %p2546_p7, %p2540_p4 }
  0xa8   :  { %2550 = shalt.err (!%p2547_p8)
}
  0xa9   :  { %171 = dma.hbm_to_vmem [thread:$0]  %s3131_s15, 1024, %s166_s7, [#allocation21], %s2611_s13, %s2611_s13, %s2612_s27  }
  0xaa   :  { %s2559_s12 = scalar_lea.vmem %s188_s29, 1024  ;;  %p2564_p10 = scmp.lt.s32.totalorder %s188_s29, %s188_s29 }
  0xab   :  { %p2560_p9 = scmp.ne.s32.totalorder %s188_s29, %s2559_s12  ;;  %p2565_p11 = scmp.lt.s32.totalorder %s2559_s12, %s2559_s12 }
  0xad   :  { %p2566_p12 = por %p2565_p11, %p2564_p10 }
  0xaf   :  { %p2567_p13 = pnand %p2566_p12, %p2560_p9 }
  0xb1   :  { %2570 = shalt.err (!%p2567_p13)
}
  0xb2   :  { %193 = dma.hbm_to_vmem [thread:$0]  %s3133_s17, 1024, %s188_s29, [#allocation24], %s2611_s13, %s2611_s13, %s2612_s27  }
  0xb3   :  { %s2627_s10 = smov [#allocation26]  }
  0xb4   :  { %s200_s3 = sshll.u32 %s2627_s10, 4  ;;  %s201_s3 = int_to_ptr.vmem [resolvable:$true] %s200_s3 }
  0xb5   :  { %s2579_s0 = scalar_lea.vmem %s201_s3, 16  ;;  %s2583_s15 = scalar_lea.vmem %s201_s3, 32 }
  0xb6   :  { %p2580_p0 = scmp.ne.s32.totalorder %s201_s3, %s2579_s0  ;;  %p2584_p1 = scmp.lt.s32.totalorder %s201_s3, %s201_s3 }
  0xb7   :  { %p2585_p2 = scmp.lt.s32.totalorder %s2583_s15, %s2579_s0 }
  0xb9   :  { %p2586_p3 = por %p2585_p2, %p2584_p1 }
  0xbb   :  { %p2587_p4 = pnand %p2586_p3, %p2580_p0 }
  0xbd   :  { %2590 = shalt.err (!%p2587_p4)
}
  0xbe   :  { %203 = dma.hbm_to_vmem [thread:$0]  %s3134_s18, 16, %s201_s3, [#allocation27]  }
  0xbf   :  { %2593 = dma.done.wait [#allocation7], 256  }
  0xc0   :  { %2594 = vsyncadd [#allocation7], 4294967040 }
  0xc1   :  { %2595 = dma.done.wait [#allocation9], 160  }
  0xc2   :  { %2596 = vsyncadd [#allocation9], 4294967136 }
  0xc3   :  { %2597 = dma.done.wait [#allocation12], 4128  }
  0xc4   :  { %2598 = vsyncadd [#allocation12], 4294963168 }
  0xc5   :  { %2599 = dma.done.wait [#allocation15], 464  }
  0xc6   :  { %2600 = vsyncadd [#allocation15], 4294966832 }
  0xc7   :  { %2601 = dma.done.wait [#allocation18], 32  }
  0xc8   :  { %2602 = vsyncadd [#allocation18], 4294967264 }
  0xc9   :  { %2603 = dma.done.wait [#allocation21], 1040  }
  0xca   :  { %2604 = vsyncadd [#allocation21], 4294966256 }
  0xcb   :  { %2605 = dma.done.wait [#allocation24], 1040  }
  0xcc   :  { %2606 = vsyncadd [#allocation24], 4294966256 }
  0xcd   :  { %2607 = dma.done.wait [#allocation27], 16  }
  0xce   :  { %2608 = vsyncadd [#allocation27], 4294967280  ;;  %s3158_s24 = sld [smem:[#allocation40_spill]]  ;;  %v2188_v16 = vld [vmem:[#allocation6 + $0x4] ss:$8 sps:$4 sm:$0xff]   ;;  %vm1035_vm0 = vcmask 1043456  }
  0xcf   :  { %v2189_v17 = vld [vmem:[#allocation11 + $0x74] ss:$8 sps:$4 sm:$0xff]   ;;  %v2191_v18 = vld [vmem:[#allocation11 + $0x70] ss:$8 sps:$4 sm:$0xff]   ;;  %504 = vmatprep.mubr.bf16.mxu0 %v2188_v16  ;;  %v2192_v19 = vld [vmem:[#allocation11 + $0x64] ss:$8 sps:$4 sm:$0xff]  }
  0xd0   :  { %739 = vmatprep.subr.bf16.mxu1 %v2189_v17  ;;  %v2194_v20 = vld [vmem:[#allocation11 + $0x60] ss:$8 sps:$4 sm:$0xff]   ;;  %v2195_v22 = vld [vmem:[#allocation11 + $0x54] ss:$8 sps:$4 sm:$0xff]   ;;  %v2197_v24 = vld [vmem:[#allocation11 + $0x50] ss:$8 sps:$4 sm:$0xff]  }
  0xd1   :  { %740 = vmatpush1.bf16.msra.mxu1 %v2191_v18  ;;  %v2198_v26 = vld [vmem:[#allocation11 + $0x44] ss:$8 sps:$4 sm:$0xff]   ;;  %v2200_v28 = vld [vmem:[#allocation11 + $0x40] ss:$8 sps:$4 sm:$0xff]   ;;  %v2201_v30 = vld [vmem:[#allocation11 + $0x34] ss:$8 sps:$4 sm:$0xff]  }
  0xd2   :  { %741 = vmatprep.subr.bf16.mxu1 %v2192_v19  ;;  %v2203_v34 = vld [vmem:[#allocation11 + $0x30] ss:$8 sps:$4 sm:$0xff]   ;;  %v2204_v35 = vld [vmem:[#allocation11 + $0x24] ss:$8 sps:$4 sm:$0xff]   ;;  %v2206_v36 = vld [vmem:[#allocation11 + $0x20] ss:$8 sps:$4 sm:$0xff]  }
  0xd3   :  { %v2207_v38 = vld [vmem:[#allocation11 + $0x14] ss:$8 sps:$4 sm:$0xff]   ;;  %v2209_v40 = vld [vmem:[#allocation11 + $0x10] ss:$8 sps:$4 sm:$0xff]   ;;  %v2210_v42 = vld [vmem:[#allocation11 + $0x4] ss:$8 sps:$4 sm:$0xff]  }
  0xd4   :  { %v2138_v1 = vld [vmem:[%s3158_s24 + $0x74] ss:$8 sps:$4 sm:$0xff]   ;;  %v2140_v2 = vld [vmem:[%s3158_s24 + $0x70] ss:$8 sps:$4 sm:$0xff]   ;;  %v2141_v3 = vld [vmem:[%s3158_s24 + $0x64] ss:$8 sps:$4 sm:$0xff]  }
  0xd5   :  { %472 = vmatprep.subr.bf16.mxu0 %v2138_v1  ;;  %v2143_v4 = vld [vmem:[%s3158_s24 + $0x60] ss:$8 sps:$4 sm:$0xff]   ;;  %v2144_v5 = vld [vmem:[%s3158_s24 + $0x54] ss:$8 sps:$4 sm:$0xff]   ;;  %v2146_v6 = vld [vmem:[%s3158_s24 + $0x50] ss:$8 sps:$4 sm:$0xff]   ;;  %742 = vmatpush1.bf16.msra.mxu1 %v2194_v20 }
  0xd6   :  { %473 = vmatpush1.bf16.msra.mxu0 %v2140_v2  ;;  %v2147_v7 = vld [vmem:[%s3158_s24 + $0x44] ss:$8 sps:$4 sm:$0xff]   ;;  %v2149_v8 = vld [vmem:[%s3158_s24 + $0x40] ss:$8 sps:$4 sm:$0xff]   ;;  %v2150_v9 = vld [vmem:[%s3158_s24 + $0x34] ss:$8 sps:$4 sm:$0xff]   ;;  %743 = vmatprep.subr.bf16.mxu1 %v2195_v22 }
  0xd7   :  { %474 = vmatprep.subr.bf16.mxu0 %v2141_v3  ;;  %v2152_v10 = vld [vmem:[%s3158_s24 + $0x30] ss:$8 sps:$4 sm:$0xff]   ;;  %v2153_v11 = vld [vmem:[%s3158_s24 + $0x24] ss:$8 sps:$4 sm:$0xff]   ;;  %v2155_v12 = vld [vmem:[%s3158_s24 + $0x20] ss:$8 sps:$4 sm:$0xff]  }
  0xd8   :  { %v2156_v13 = vld [vmem:[%s3158_s24 + $0x14] ss:$8 sps:$4 sm:$0xff]   ;;  %v2158_v14 = vld [vmem:[%s3158_s24 + $0x10] ss:$8 sps:$4 sm:$0xff]   ;;  %v2159_v15 = vld [vmem:[%s3158_s24 + $0x4] ss:$8 sps:$4 sm:$0xff]  }
  0xd9   :  { %v2161_v21 = vld [vmem:[%s3158_s24] ss:$8 sps:$4 sm:$0xff]   ;;  %v2162_v23 = vld [vmem:[%s3158_s24 + $0xf4] ss:$8 sps:$4 sm:$0xff]   ;;  %v2164_v25 = vld [vmem:[%s3158_s24 + $0xf0] ss:$8 sps:$4 sm:$0xff]   ;;  %744 = vmatpush1.bf16.msra.mxu1 %v2197_v24 }
  0xda   :  { %475 = vmatpush1.bf16.msra.mxu0 %v2143_v4  ;;  %v2165_v27 = vld [vmem:[%s3158_s24 + $0xe4] ss:$8 sps:$4 sm:$0xff]   ;;  %v2167_v29 = vld [vmem:[%s3158_s24 + $0xe0] ss:$8 sps:$4 sm:$0xff]   ;;  %745 = vmatprep.subr.bf16.mxu1 %v2198_v26  ;;  %v2168_v31 = vld [vmem:[%s3158_s24 + $0xd4] ss:$8 sps:$4 sm:$0xff]  }
  0xdb   :  { %476 = vmatprep.subr.bf16.mxu0 %v2144_v5  ;;  %v2170_v32 = vld [vmem:[%s3158_s24 + $0xd0] ss:$8 sps:$4 sm:$0xff]   ;;  %v2171_v33 = vld [vmem:[%s3158_s24 + $0xc4] ss:$8 sps:$4 sm:$0xff]   ;;  %v2173_v37 = vld [vmem:[%s3158_s24 + $0xc0] ss:$8 sps:$4 sm:$0xff]  }
  0xdc   :  { %v2174_v39 = vld [vmem:[%s3158_s24 + $0xb4] ss:$8 sps:$4 sm:$0xff]   ;;  %v2176_v41 = vld [vmem:[%s3158_s24 + $0xb0] ss:$8 sps:$4 sm:$0xff]   ;;  %v2177_v43 = vld [vmem:[%s3158_s24 + $0xa4] ss:$8 sps:$4 sm:$0xff]  }
  0xdd   :  { %746 = vmatpush1.bf16.msra.mxu1 %v2200_v28  ;;  %v2212_v44 = vld [vmem:[#allocation11] ss:$8 sps:$4 sm:$0xff]   ;;  %v2213_v46 = vld [vmem:[#allocation11 + $0xf4] ss:$8 sps:$4 sm:$0xff]   ;;  %v2215_v48 = vld [vmem:[#allocation11 + $0xf0] ss:$8 sps:$4 sm:$0xff]  }
  0xde   :  { %477 = vmatpush1.bf16.msra.mxu0 %v2146_v6  ;;  %747 = vmatprep.subr.bf16.mxu1 %v2201_v30  ;;  %v2179_v45 = vld [vmem:[%s3158_s24 + $0xa0] ss:$8 sps:$4 sm:$0xff]   ;;  %v2180_v47 = vld [vmem:[%s3158_s24 + $0x94] ss:$8 sps:$4 sm:$0xff]   ;;  %v2182_v49 = vld [vmem:[%s3158_s24 + $0x90] ss:$8 sps:$4 sm:$0xff]  }
  0xdf   :  { %478 = vmatprep.subr.bf16.mxu0 %v2147_v7  ;;  %v2216_v50 = vld [vmem:[#allocation11 + $0xe4] ss:$8 sps:$4 sm:$0xff]   ;;  %v2218_v52 = vld [vmem:[#allocation11 + $0xe0] ss:$8 sps:$4 sm:$0xff]   ;;  %v2219_v54 = vld [vmem:[#allocation11 + $0xd4] ss:$8 sps:$4 sm:$0xff]  }
  0xe0   :  { %v2183_v51 = vld [vmem:[%s3158_s24 + $0x84] ss:$8 sps:$4 sm:$0xff]   ;;  %v2185_v53 = vld [vmem:[%s3158_s24 + $0x80] ss:$8 sps:$4 sm:$0xff]   ;;  %v2221_v56 = vld [vmem:[#allocation11 + $0xd0] ss:$8 sps:$4 sm:$0xff]  }
  0xe1   :  { %748 = vmatpush1.bf16.msra.mxu1 %v2203_v34  ;;  %v2186_v55 = vld [vmem:[#allocation6] ss:$8 sps:$4 sm:$0xff]   ;;  %v2225_v59 = vld [vmem:[#allocation11 + $0xb4] ss:$8 sps:$4 sm:$0xff]   ;;  %v2628_v3 = vmov 0.0   ;;  %s3159_s4 = sld [smem:[#allocation44_spill]] }
  0xe2   :  { %479 = vmatpush1.bf16.msra.mxu0 %v2149_v8  ;;  %749 = vmatprep.subr.bf16.mxu1 %v2204_v35  ;;  %v2222_v57 = vld [vmem:[#allocation11 + $0xc4] ss:$8 sps:$4 sm:$0xff]   ;;  %v2224_v58 = vld [vmem:[#allocation11 + $0xc0] ss:$8 sps:$4 sm:$0xff]   ;;  %v2227_v60 = vld [vmem:[#allocation11 + $0xb0] ss:$8 sps:$4 sm:$0xff]  }
  0xe3   :  { %480 = vmatprep.subr.bf16.mxu0 %v2150_v9  ;;  %v2228_v61 = vld [vmem:[#allocation11 + $0xa4] ss:$8 sps:$4 sm:$0xff]   ;;  %v2230_v62 = vld [vmem:[#allocation11 + $0xa0] ss:$8 sps:$4 sm:$0xff]   ;;  %v2231_v63 = vld [vmem:[#allocation11 + $0x94] ss:$8 sps:$4 sm:$0xff]  }
  0xe4   :  { %v2233_v0 = vld [vmem:[#allocation11 + $0x90] ss:$8 sps:$4 sm:$0xff]   ;;  %v2234_v1 = vld [vmem:[#allocation11 + $0x84] ss:$8 sps:$4 sm:$0xff]   ;;  %v2236_v2 = vld [vmem:[#allocation11 + $0x80] ss:$8 sps:$4 sm:$0xff]  }
  0xe5   :  { %750 = vmatpush1.bf16.msra.mxu1 %v2206_v36  ;;  %s257_s6 = sld [smem:[#allocation4]]  ;;  %vm2629_vm1 = vmmov 0   ;;  %vm1031_vm2 = vcmask 457728   ;;  %vm1343_vm3 = vcmask 519168   ;;  %vm1357_vm4 = vcmask 1043968  }
  0xe6   :  { %481 = vmatpush1.bf16.msra.mxu0 %v2152_v10  ;;  %751 = vmatprep.subr.bf16.mxu1 %v2207_v38  ;;  %s1813_s24 = sld [smem:[#allocation4 + $0x1]]  ;;  %vm1748_vm5 = vcmask 523264   ;;  %vm1764_vm6 = vcmask 7168  }
  0xe7   :  { %482 = vmatprep.subr.bf16.mxu0 %v2153_v11  ;;  %v2242_v4 = vld [vmem:[%s3159_s4 + $0x78] sm:$0xff]   ;;  %v2244_v6 = vld [vmem:[%s3159_s4 + $0x70] sm:$0xff]   ;;  %v2246_v8 = vld [vmem:[%s3159_s4 + $0x68] sm:$0xff]   ;;  %s3160_s3 = sld [smem:[#allocation45_spill]] }
  0xe8   :  { %v2243_v5 = vld [vmem:[%s3159_s4 + $0x38] sm:$0xff]   ;;  %v2245_v7 = vld [vmem:[%s3159_s4 + $0x30] sm:$0xff]   ;;  %v2247_v9 = vld [vmem:[%s3159_s4 + $0x28] sm:$0xff]   ;;  %s1846_s28 = sld [smem:[#allocation4 + $0x2]] }
  0xe9   :  { %752 = vmatpush1.bf16.msra.mxu1 %v2209_v40  ;;  %v2248_v10 = vld [vmem:[%s3159_s4 + $0x60] sm:$0xff]   ;;  %s1872_s29 = sld [smem:[#allocation4 + $0x4]] }
  0xea   :  { %483 = vmatpush1.bf16.msra.mxu0 %v2155_v12  ;;  %753 = vmatprep.subr.bf16.mxu1 %v2210_v42  ;;  %v2249_v11 = vld [vmem:[%s3159_s4 + $0x20] sm:$0xff]   ;;  %v292_v12 = vlaneseq  ;;  %s1882_s1 = sld [smem:[#allocation4 + $0x5]] }
  0xeb   :  { %484 = vmatprep.subr.bf16.mxu0 %v2156_v13  ;;  %v523_v28 = vstv %s257_s6  ;;  %s1896_s10 = sld [smem:[#allocation4 + $0x6]] }
  0xec   :  { %v2937_v13 = vshrl.u32 %v292_v12, 7  ;;  %s1907_s22 = sld [smem:[#allocation4 + $0x7]] }
  0xed   :  { %754 = vmatpush1.bf16.msra.mxu1 %v2212_v44 }
  0xee   :  { %485 = vmatpush1.bf16.msra.mxu0 %v2158_v14  ;;  %755 = vmatprep.subr.bf16.mxu1 %v2213_v46  ;;  %v294_v14 = vsub.s32 0, %v2937_v13  ;;  %v298_v16 = vsub.s32 1, %v2937_v13 }
  0xef   :  { %486 = vmatprep.subr.bf16.mxu0 %v2159_v15  ;;  %v290_v15 = vld [vmem:[#allocation10] sm:$0x3] }
  0xf0   :  { %v295_v17 = vrot.slane %v290_v15, %v294_v14  ;;  %v299_v18 = vrot.slane %v290_v15, %v298_v16 }
  0xf1   :  { %756 = vmatpush2.bf16.msra.mxu1 %v2215_v48  ;;  %v2238_v48 = vld [vmem:[#allocation16 + $0x10] sm:$0xff]  }
  0xf2   :  { %487 = vmatpush1.bf16.msra.mxu0 %v2161_v21  ;;  %757 = vmatprep.subr.bf16.mxu1 %v2216_v50  ;;  %v2240_v50 = vld [vmem:[#allocation16] sm:$0xff]  }
  0xf3   :  { %488 = vmatprep.subr.bf16.mxu0 %v2162_v23 }
  0xf5   :  { %758 = vmatpush2.bf16.msra.mxu1 %v2218_v52  ;;  %v2250_v52 = vld [vmem:[%s3127_s11 + $0x38] sm:$0xff]  }
  0xf6   :  { %489 = vmatpush2.bf16.msra.mxu0 %v2164_v25  ;;  %759 = vmatprep.subr.bf16.mxu1 %v2219_v54  ;;  %v2252_v54 = vld [vmem:[%s3159_s4 + $0x18] sm:$0xff]  }
  0xf7   :  { %490 = vmatprep.subr.bf16.mxu0 %v2165_v27 }
  0xf9   :  { %760 = vmatpush2.bf16.msra.mxu1 %v2221_v56  ;;  %v2254_v56 = vld [vmem:[%s3159_s4 + $0x50] sm:$0xff]  }
  0xfa   :  { %491 = vmatpush2.bf16.msra.mxu0 %v2167_v29  ;;  %761 = vmatprep.subr.bf16.mxu1 %v2222_v57  ;;  %v2255_v57 = vld [vmem:[%s3159_s4 + $0x10] sm:$0xff]  }
  0xfb   :  { %492 = vmatprep.subr.bf16.mxu0 %v2168_v31 }
  0xfd   :  { %762 = vmatpush2.bf16.msra.mxu1 %v2224_v58  ;;  %v2256_v58 = vld [vmem:[%s3127_s11 + $0x28] sm:$0xff]  }
  0xfe   :  { %493 = vmatpush2.bf16.msra.mxu0 %v2170_v32  ;;  %763 = vmatprep.subr.bf16.mxu1 %v2225_v59  ;;  %v2257_v59 = vld [vmem:[%s3159_s4 + $0x48] sm:$0xff]  }
  0xff   :  { %494 = vmatprep.subr.bf16.mxu0 %v2171_v33 }
 0x101   :  { %764 = vmatpush2.bf16.msra.mxu1 %v2227_v60  ;;  %v2258_v60 = vld [vmem:[%s3159_s4 + $0x8] sm:$0xff]  }
 0x102   :  { %495 = vmatpush2.bf16.msra.mxu0 %v2173_v37  ;;  %765 = vmatprep.subr.bf16.mxu1 %v2228_v61  ;;  %v2259_v61 = vld [vmem:[%s3127_s11 + $0x20] sm:$0xff]  }
 0x103   :  { %496 = vmatprep.subr.bf16.mxu0 %v2174_v39 }
 0x105   :  { %766 = vmatpush2.bf16.msra.mxu1 %v2230_v62  ;;  %v2260_v62 = vld [vmem:[%s3159_s4 + $0x40] sm:$0xff]  }
 0x106   :  { %497 = vmatpush2.bf16.msra.mxu0 %v2176_v41  ;;  %767 = vmatprep.subr.bf16.mxu1 %v2231_v63  ;;  %v2237_v41 = vld [vmem:[#allocation16 + $0x18] ss:$0 sps:$4 sm:$0xff]   ;;  %v2261_v63 = vld [vmem:[%s3159_s4] sm:$0xff]  }
 0x107   :  { %498 = vmatprep.subr.bf16.mxu0 %v2177_v43 }
 0x109   :  { %768 = vmatpush2.bf16.msra.mxu1 %v2233_v0  ;;  %v2262_v0 = vld [vmem:[%s3127_s11 + $0x18] sm:$0xff]  }
 0x10a   :  { %499 = vmatpush2.bf16.msra.mxu0 %v2179_v45  ;;  %769 = vmatprep.subr.bf16.mxu1 %v2234_v1  ;;  %v2263_v1 = vld [vmem:[%s3127_s11 + $0x10] sm:$0xff]  }
 0x10b   :  { %500 = vmatprep.subr.bf16.mxu0 %v2180_v47  ;;  %v1037_v47 = vsel %vm1035_vm0, %v2237_v41, 0 }
 0x10d   :  { %770 = vmatpush2.bf16.msra.mxu1 %v2236_v2  ;;  %v2264_v2 = vld [vmem:[%s3127_s11 + $0x8] sm:$0xff]  }
 0x10e   :  { %501 = vmatpush2.bf16.msra.mxu0 %v2182_v49  ;;  %2005 = vmatprep.subr.bf16.mxu1 %v2628_v3  ;;  %v2239_v49 = vld [vmem:[#allocation16 + $0x8] sm:$0xff]  }
 0x10f   :  { %502 = vmatprep.subr.bf16.mxu0 %v2183_v51  ;;  %v2241_v51 = vld [vmem:[#allocation8] sm:$0xff]  }
 0x112   :  { %503 = vmatpush2.bf16.msra.mxu0 %v2185_v53  ;;  %v2251_v53 = vld [vmem:[%s3159_s4 + $0x58] sm:$0xff]  }
 0x113   :  { %1933 = vmatprep.subr.bf16.mxu0 %v2242_v4  ;;  %v2265_v4 = vld [vmem:[%s3127_s11] sm:$0xff]  }
 0x115   :  { %505 = vmatmul.mubr.bf16.vlgmr.msra.gmra.mxu0 %v2186_v55  ;;  %v2253_v55 = vld [vmem:[%s3127_s11 + $0x30] sm:$0xff]   ;;  %s1864_s11 = sld [smem:[#allocation4 + $0x3]] }
 0x116   :  { %1934 = vmatpush3.bf16.msra.mxu0 %v2243_v5  ;;  %v567_v5 = vld [vmem:[#allocation13] sm:$0x3] }
 0x117   :  { %1935 = vmatprep.subr.bf16.mxu0 %v2244_v6  ;;  %v572_v6 = vrot.slane %v567_v5, %v294_v14 }
 0x11a   :  { %1936 = vmatpush3.bf16.msra.mxu0 %v2245_v7  ;;  %v576_v7 = vrot.slane %v567_v5, %v298_v16 }
 0x11b   :  { %1937 = vmatprep.subr.bf16.mxu0 %v2246_v8  ;;  %v1084_v41 = vstv %s1864_s11 }
 0x11e   :  { %1938 = vmatpush3.bf16.msra.mxu0 %v2247_v9 }
 0x11f   :  { %1939 = vmatprep.subr.bf16.mxu0 %v2248_v10 }
 0x122   :  { %1940 = vmatpush3.bf16.msra.mxu0 %v2249_v11 }
 0x123   :  { %1941 = vmatprep.subr.bf16.mxu0 %v2251_v53  ;;  %v2267_v53 = vld [vmem:[%s3160_s3 + $0x30] sm:$0xff]  }
 0x126   :  { %1942 = vmatpush3.bf16.msra.mxu0 %v2252_v54  ;;  %v2268_v54 = vld [vmem:[%s3160_s3 + $0x28] sm:$0xff]  }
 0x127   :  { %1943 = vmatprep.subr.bf16.mxu0 %v2254_v56  ;;  %v2270_v56 = vld [vmem:[%s3160_s3 + $0x18] sm:$0xff]  }
 0x12a   :  { %1944 = vmatpush3.bf16.msra.mxu0 %v2255_v57  ;;  %v2271_v57 = vld [vmem:[%s3160_s3 + $0x10] sm:$0xff]  }
 0x12b   :  { %1945 = vmatprep.subr.bf16.mxu0 %v2257_v59  ;;  %v2273_v59 = vld [vmem:[%s3160_s3] sm:$0xff]  }
 0x12e   :  { %1946 = vmatpush3.bf16.msra.mxu0 %v2258_v60 }
 0x12f   :  { %1947 = vmatprep.subr.bf16.mxu0 %v2260_v62 }
 0x132   :  { %1948 = vmatpush3.bf16.msra.mxu0 %v2261_v63 }
 0x133   :  { %2037 = vmatprep.subr.bf16.mxu0 %v2628_v3 }
 0x1d5   :  { %v506_v19 = vpop.f32.mrf.mxu0 }
 0x1d6   :  { %v507_v20 = vadd.f32 %v506_v19, %v295_v17 }
 0x1d7   :  { %v508_v21 = vpop.f32.mrf.mxu0 }
 0x1d8   :  { %v509_v22 = vadd.f32 %v508_v21, %v299_v18  ;;  %v519_v26 = vmin.f32 %v507_v20, 0.0  ;;  %v515_v39 = vmax.f32 %v507_v20, 0.0  ;;  %v790_v21 = vstv %s1813_s24 }
 0x1d9   :  { %v510_v23 = vpop.f32.mrf.mxu0 }
 0x1da   :  { %v520_v24 = vmin.f32 %v509_v22, 0.0  ;;  %v511_v25 = vadd.f32 %v510_v23, %v295_v17  ;;  %v524_v34 = vmul.f32 %v523_v28, %v519_v26  ;;  %v516_v36 = vmax.f32 %v509_v22, 0.0 }
 0x1db   :  { %v512_v27 = vpop.f32.mrf.mxu0 }
 0x1dc   :  { %v521_v29 = vmin.f32 %v511_v25, 0.0  ;;  %v513_v30 = vadd.f32 %v512_v27, %v299_v18  ;;  %v525_v33 = vmul.f32 %v523_v28, %v520_v24  ;;  %v517_v35 = vmax.f32 %v511_v25, 0.0 }
 0x1dd   :  { %v528_v44 = vadd.f32 %v524_v34, %v515_v39 }
 0x1de   :  { %v526_v31 = vmul.f32 %v523_v28, %v521_v29  ;;  %v522_v32 = vmin.f32 %v513_v30, 0.0  ;;  %v518_v37 = vmax.f32 %v513_v30, 0.0  ;;  %v529_v42 = vadd.f32 %v525_v33, %v516_v36  ;;  %v2266_v36 = vld [vmem:[%s3160_s3 + $0x38] sm:$0xff]  }
 0x1e0   :  { %v527_v38 = vmul.f32 %v523_v28, %v522_v32  ;;  %v530_v40 = vadd.f32 %v526_v31, %v517_v35  ;;  %v1865_v32 = vld [vmem:[#allocation17] ss:$0 sm:$0xff] }
 0x1e2   :  { %v531_v43 = vadd.f32 %v527_v38, %v518_v37  ;;  %v532_v46 = vpack.c.bf16 %v530_v40, %v528_v44 }
 0x1e4   :  { %v533_v45 = vpack.c.bf16 %v531_v43, %v529_v42 }
 0x1e6   :  { %771 = vmatprep.mubr.bf16.mxu1 %v533_v45 }
 0x1e7   :  { %772 = vmatmul.mubr.bf16.vlgmr.msra.gmra.mxu1 %v532_v46 }
 0x1e8   :  { %2006 = vmatpush3.bf16.msra.mxu1 %v1037_v47  ;;  %2013 = vmatprep.mubr.msk.bf16.mxu1 %vm2629_vm1, %v2628_v3 }
 0x1e9   :  { %2007 = vmatprep.subr.bf16.mxu1 %v2628_v3 }
 0x1ec   :  { %2008 = vmatpush3.bf16.msra.mxu1 %v2238_v48 }
 0x1ed   :  { %2009 = vmatprep.subr.bf16.mxu1 %v2628_v3 }
 0x1f0   :  { %2010 = vmatpush3.bf16.msra.mxu1 %v2239_v49 }
 0x1f1   :  { %2011 = vmatprep.subr.bf16.mxu1 %v2628_v3 }
 0x1f4   :  { %2012 = vmatpush3.bf16.msra.mxu1 %v2240_v50 }
 0x1f5   :  { %2017 = vmatprep.subr.bf16.mxu1 %v2628_v3 }
 0x1f7   :  { %2014 = vmatmul.mubr.msk.bf16.vlgmr.msra.gmra.mxu1 %vm1031_vm2, %v2241_v51 }
 0x1f8   :  { %2018 = vmatpush3.bf16.msra.mxu1 %v2250_v52  ;;  %2033 = vmatprep.mubr.msk.bf16.mxu1 %vm2629_vm1, %v2628_v3 }
 0x1f9   :  { %2019 = vmatprep.subr.bf16.mxu1 %v2628_v3 }
 0x1fc   :  { %2020 = vmatpush3.bf16.msra.mxu1 %v2253_v55  ;;  %v2269_v55 = vld [vmem:[%s3160_s3 + $0x20] sm:$0xff]  }
 0x1fd   :  { %2021 = vmatprep.subr.bf16.mxu1 %v2628_v3 }
 0x200   :  { %2022 = vmatpush3.bf16.msra.mxu1 %v2256_v58  ;;  %v2272_v58 = vld [vmem:[%s3160_s3 + $0x8] sm:$0xff]  }
 0x201   :  { %2023 = vmatprep.subr.bf16.mxu1 %v2628_v3 }
 0x204   :  { %2024 = vmatpush3.bf16.msra.mxu1 %v2259_v61  ;;  %v1847_v61 = vld [vmem:[#allocation14] ss:$0 sm:$0xff] }
 0x205   :  { %2025 = vmatprep.subr.bf16.mxu1 %v2628_v3 }
 0x208   :  { %2026 = vmatpush3.bf16.msra.mxu1 %v2262_v0 }
 0x209   :  { %2027 = vmatprep.subr.bf16.mxu1 %v2628_v3 }
 0x20c   :  { %2028 = vmatpush3.bf16.msra.mxu1 %v2263_v1 }
 0x20d   :  { %2029 = vmatprep.subr.bf16.mxu1 %v2628_v3 }
 0x210   :  { %2030 = vmatpush3.bf16.msra.mxu1 %v2264_v2  ;;  %v982_v2 = vstv %s1846_s28 }
 0x211   :  { %2031 = vmatprep.subr.bf16.mxu1 %v2628_v3 }
 0x214   :  { %2032 = vmatpush3.bf16.msra.mxu1 %v2265_v4 }
 0x215   :  { %2057 = vmatprep.subr.bf16.mxu1 %v2628_v3 }
 0x2a7   :  { %v773_v8 = vpop.f32.mrf.mxu1 }
 0x2a8   :  { %v774_v10 = vadd.f32 %v773_v8, %v572_v6 }
 0x2a9   :  { %v775_v9 = vpop.f32.mrf.mxu1 }
 0x2aa   :  { %v776_v11 = vadd.f32 %v775_v9, %v576_v7  ;;  %v786_v19 = vmin.f32 %v774_v10, 0.0  ;;  %v782_v28 = vmax.f32 %v774_v10, 0.0  ;;  %v1873_v10 = vld [vmem:[#allocation19] ss:$0 sm:$0xff] }
 0x2ab   :  { %v777_v12 = vpop.f32.mrf.mxu1 }
 0x2ac   :  { %v778_v15 = vadd.f32 %v777_v12, %v572_v6  ;;  %v787_v17 = vmin.f32 %v776_v11, 0.0  ;;  %v791_v14 = vmul.f32 %v790_v21, %v786_v19  ;;  %v783_v13 = vmax.f32 %v776_v11, 0.0 }
 0x2ad   :  { %v779_v18 = vpop.f32.mrf.mxu1 }
 0x2ae   :  { %v788_v20 = vmin.f32 %v778_v15, 0.0  ;;  %v780_v22 = vadd.f32 %v779_v18, %v576_v7  ;;  %v792_v24 = vmul.f32 %v790_v21, %v787_v17  ;;  %v784_v26 = vmax.f32 %v778_v15, 0.0 }
 0x2af   :  { %v795_v33 = vadd.f32 %v791_v14, %v782_v28 }
 0x2b0   :  { %v793_v23 = vmul.f32 %v790_v21, %v788_v20  ;;  %v789_v25 = vmin.f32 %v780_v22, 0.0  ;;  %v785_v16 = vmax.f32 %v780_v22, 0.0  ;;  %v796_v30 = vadd.f32 %v792_v24, %v783_v13 }
 0x2b1   :  { %v1207_v24 = vstv %s1872_s29 }
 0x2b2   :  { %v794_v27 = vmul.f32 %v790_v21, %v789_v25  ;;  %v797_v29 = vadd.f32 %v793_v23, %v784_v26 }
 0x2b4   :  { %v798_v31 = vadd.f32 %v794_v27, %v785_v16  ;;  %v799_v37 = vpack.c.bf16 %v797_v29, %v795_v33 }
 0x2b6   :  { %v800_v35 = vpack.c.bf16 %v798_v31, %v796_v30 }
 0x2b7   :  { %v1073_v34 = vpop.f32.mrf.mxu1 }
 0x2b8   :  { %v1074_v38 = vadd.f32 %v1865_v32, %v1073_v34  ;;  %969 = vmatprep.mubr.bf16.mxu0 %v800_v35  ;;  %v2274_v34 = vld [vmem:[#allocation22 + $0x38] sm:$0xff]   ;;  %v2275_v35 = vld [vmem:[#allocation22 + $0x30] sm:$0xff]  }
 0x2b9   :  { %v2015_v39 = vpop.f32.mrf.mxu1  ;;  %970 = vmatmul.mubr.bf16.vlgmr.msra.gmra.mxu0 %v799_v37  ;;  %v2277_v37 = vld [vmem:[#allocation22 + $0x20] sm:$0xff]  }
 0x2ba   :  { %v1082_v40 = vmin.f32 %v1074_v38, 0.0  ;;  %2038 = vmatpush3.bf16.msra.mxu0 %v2266_v36  ;;  %2053 = vmatprep.mubr.msk.bf16.mxu0 %vm2629_vm1, %v2628_v3  ;;  %v1080_v47 = vmax.f32 %v1074_v38, 0.0  ;;  %v2276_v36 = vld [vmem:[#allocation22 + $0x28] sm:$0xff]   ;;  %v2278_v38 = vld [vmem:[#allocation22 + $0x18] sm:$0xff]  }
 0x2bb   :  { %v1076_v42 = vpop.f32.mrf.mxu1  ;;  %2039 = vmatprep.subr.bf16.mxu0 %v2628_v3  ;;  %v1883_v39 = vld [vmem:[#allocation20] ss:$0 sm:$0xff] }
 0x2bc   :  { %v1077_v43 = vadd.f32 %v1865_v32, %v1076_v42  ;;  %v1085_v45 = vmul.f32 %v1084_v41, %v1082_v40  ;;  %v2279_v40 = vld [vmem:[#allocation22 + $0x10] sm:$0xff]  }
 0x2bd   :  { %v2016_v44 = vpop.f32.mrf.mxu1 }
 0x2be   :  { %v1083_v46 = vmin.f32 %v1077_v43, 0.0  ;;  %v1081_v48 = vmax.f32 %v1077_v43, 0.0  ;;  %v1087_v50 = vadd.f32 %v1085_v45, %v1080_v47  ;;  %2040 = vmatpush3.bf16.msra.mxu0 %v2267_v53  ;;  %v1330_v44 = vstv %s1882_s1  ;;  %v2280_v45 = vld [vmem:[#allocation22 + $0x8] sm:$0xff]  }
 0x2bf   :  { %2041 = vmatprep.subr.bf16.mxu0 %v2628_v3 }
 0x2c0   :  { %v1086_v49 = vmul.f32 %v1084_v41, %v1083_v46 }
 0x2c2   :  { %v1088_v51 = vadd.f32 %v1086_v49, %v1081_v48  ;;  %2042 = vmatpush3.bf16.msra.mxu0 %v2268_v54  ;;  %v2281_v48 = vld [vmem:[#allocation22] sm:$0xff]  }
 0x2c3   :  { %2043 = vmatprep.subr.bf16.mxu0 %v2628_v3 }
 0x2c4   :  { %v1089_v52 = vpack.c.bf16 %v1088_v51, %v1087_v50 }
 0x2c6   :  { %2034 = vmatmul.mubr.bf16.vlgmr.msra.gmra.mxu1 %v1089_v52  ;;  %2044 = vmatpush3.bf16.msra.mxu0 %v2269_v55 }
 0x2c7   :  { %2073 = vmatprep.mubr.msk.bf16.mxu1 %vm2629_vm1, %v2628_v3  ;;  %2045 = vmatprep.subr.bf16.mxu0 %v2628_v3 }
 0x2c8   :  { %2058 = vmatpush3.bf16.msra.mxu1 %v2274_v34 }
 0x2c9   :  { %2059 = vmatprep.subr.bf16.mxu1 %v2628_v3 }
 0x2ca   :  { %2046 = vmatpush3.bf16.msra.mxu0 %v2270_v56 }
 0x2cb   :  { %2047 = vmatprep.subr.bf16.mxu0 %v2628_v3 }
 0x2cc   :  { %2060 = vmatpush3.bf16.msra.mxu1 %v2275_v35 }
 0x2cd   :  { %2061 = vmatprep.subr.bf16.mxu1 %v2628_v3 }
 0x2ce   :  { %2048 = vmatpush3.bf16.msra.mxu0 %v2271_v57 }
 0x2cf   :  { %2049 = vmatprep.subr.bf16.mxu0 %v2628_v3 }
 0x2d0   :  { %2062 = vmatpush3.bf16.msra.mxu1 %v2276_v36 }
 0x2d1   :  { %2063 = vmatprep.subr.bf16.mxu1 %v2628_v3 }
 0x2d2   :  { %2050 = vmatpush3.bf16.msra.mxu0 %v2272_v58 }
 0x2d3   :  { %2051 = vmatprep.subr.bf16.mxu0 %v2628_v3 }
 0x2d4   :  { %2064 = vmatpush3.bf16.msra.mxu1 %v2277_v37 }
 0x2d5   :  { %2065 = vmatprep.subr.bf16.mxu1 %v2628_v3 }
 0x2d6   :  { %2052 = vmatpush3.bf16.msra.mxu0 %v2273_v59  ;;  %v2283_v59 = vld [vmem:[#allocation25 + $0x38] sm:$0xff]  }
 0x2d7   :  { %2077 = vmatprep.subr.bf16.mxu0 %v2628_v3 }
 0x2d8   :  { %2066 = vmatpush3.bf16.msra.mxu1 %v2278_v38  ;;  %v1608_v38 = vstv %s1907_s22 }
 0x2d9   :  { %2067 = vmatprep.subr.bf16.mxu1 %v2628_v3 }
 0x2dc   :  { %2068 = vmatpush3.bf16.msra.mxu1 %v2279_v40 }
 0x2dd   :  { %2069 = vmatprep.subr.bf16.mxu1 %v2628_v3 }
 0x2e0   :  { %2070 = vmatpush3.bf16.msra.mxu1 %v2280_v45 }
 0x2e1   :  { %2071 = vmatprep.subr.bf16.mxu1 %v2628_v3 }
 0x2e4   :  { %2072 = vmatpush3.bf16.msra.mxu1 %v2281_v48 }
 0x2e5   :  { %2097 = vmatprep.subr.bf16.mxu1 %v2628_v3 }
 0x379   :  { %v1949_v60 = vpop.f32.mrf.mxu0 }
 0x37b   :  { %v1950_v62 = vpop.f32.mrf.mxu0 }
 0x37c   :  { %v1951_v63 = vadd.f32 %v1950_v62, %v1949_v60  ;;  %v2285_v62 = vld [vmem:[#allocation25 + $0x28] sm:$0xff]  }
 0x37d   :  { %v1952_v0 = vpop.f32.mrf.mxu0 }
 0x37e   :  { %v972_v1 = vadd.f32 %v1951_v63, %v1847_v61  ;;  %v2286_v63 = vld [vmem:[#allocation25 + $0x20] sm:$0xff]  }
 0x37f   :  { %v1953_v4 = vpop.f32.mrf.mxu0 }
 0x380   :  { %v980_v5 = vmin.f32 %v972_v1, 0.0  ;;  %v1954_v6 = vadd.f32 %v1953_v4, %v1952_v0  ;;  %v978_v7 = vmax.f32 %v972_v1, 0.0  ;;  %v2287_v4 = vld [vmem:[#allocation25 + $0x18] sm:$0xff]  }
 0x382   :  { %v983_v8 = vmul.f32 %v982_v2, %v980_v5  ;;  %v975_v9 = vadd.f32 %v1954_v6, %v1847_v61  ;;  %v2284_v61 = vld [vmem:[#allocation25 + $0x30] sm:$0xff]   ;;  %v2289_v6 = vld [vmem:[#allocation25 + $0x8] sm:$0xff]  }
 0x383   :  { %v2288_v5 = vld [vmem:[#allocation25 + $0x10] sm:$0xff]  }
 0x384   :  { %v985_v11 = vadd.f32 %v983_v8, %v978_v7  ;;  %v981_v12 = vmin.f32 %v975_v9, 0.0  ;;  %v979_v18 = vmax.f32 %v975_v9, 0.0  ;;  %v2290_v7 = vld [vmem:[#allocation25] sm:$0xff]   ;;  %v2291_v8 = vld [vmem:[%s3135_s19 + $0x38] sm:$0xff]  }
 0x385   :  { %v2292_v9 = vld [vmem:[%s3135_s19 + $0x30] sm:$0xff]  }
 0x386   :  { %v1196_v15 = vpop.f32.mrf.mxu1  ;;  %v1929_v17 = vpack.c.bf16 %v985_v11, %v985_v11  ;;  %v984_v19 = vmul.f32 %v982_v2, %v981_v12  ;;  %v2294_v11 = vld [vmem:[%s3135_s19 + $0x20] sm:$0xff]   ;;  %v1897_v12 = vld [vmem:[#allocation23] ss:$0 sm:$0xff] }
 0x387   :  { %v1197_v20 = vadd.f32 %v1873_v10, %v1196_v15 }
 0x388   :  { %v2035_v21 = vpop.f32.mrf.mxu1  ;;  %v986_v22 = vadd.f32 %v984_v19, %v979_v18  ;;  %1344 = vst.msk [vmem:[#allocation2] sm:$0xf] %vm1343_vm3, %v1929_v17 }
 0x389   :  { %v1205_v23 = vmin.f32 %v1197_v20, 0.0  ;;  %v1203_v28 = vmax.f32 %v1197_v20, 0.0  ;;  %v1485_v20 = vstv %s1896_s10 }
 0x38a   :  { %v1199_v25 = vpop.f32.mrf.mxu1  ;;  %v1930_v14 = vpack.c.bf16 %v986_v22, %v986_v22 }
 0x38b   :  { %v1200_v26 = vadd.f32 %v1873_v10, %v1199_v25  ;;  %v1208_v16 = vmul.f32 %v1207_v24, %v1205_v23  ;;  %v2293_v10 = vld [vmem:[%s3135_s19 + $0x28] sm:$0xff]  }
 0x38c   :  { %v2036_v13 = vpop.f32.mrf.mxu1  ;;  %1345 = vst.msk [vmem:[#allocation2 + $0x4] sm:$0xf] %vm1343_vm3, %v1930_v14 }
 0x38d   :  { %v1206_v27 = vmin.f32 %v1200_v26, 0.0  ;;  %v1204_v29 = vmax.f32 %v1200_v26, 0.0  ;;  %v1210_v31 = vadd.f32 %v1208_v16, %v1203_v28 }
 0x38f   :  { %v1209_v30 = vmul.f32 %v1207_v24, %v1206_v27 }
 0x391   :  { %v1211_v32 = vadd.f32 %v1209_v30, %v1204_v29  ;;  %v2295_v29 = vld [vmem:[%s3135_s19 + $0x18] sm:$0xff]   ;;  %v2296_v30 = vld [vmem:[%s3135_s19 + $0x10] sm:$0xff]  }
 0x393   :  { %v1212_v33 = vpack.c.bf16 %v1211_v32, %v1210_v31  ;;  %v2297_v31 = vld [vmem:[%s3135_s19 + $0x8] sm:$0xff]   ;;  %v2298_v32 = vld [vmem:[%s3135_s19] sm:$0xff]   ;;  %s1917_s19 = sld [smem:[#allocation4 + $0x8]] }
 0x395   :  { %2054 = vmatmul.mubr.bf16.vlgmr.msra.gmra.mxu0 %v1212_v33  ;;  %v1908_v33 = vld [vmem:[#allocation26] ss:$0 sm:$0xff] }
 0x396   :  { %2093 = vmatprep.mubr.msk.bf16.mxu0 %vm2629_vm1, %v2628_v3  ;;  %2078 = vmatpush3.bf16.msra.mxu0 %v2283_v59 }
 0x397   :  { %2079 = vmatprep.subr.bf16.mxu0 %v2628_v3 }
 0x39a   :  { %2080 = vmatpush3.bf16.msra.mxu0 %v2284_v61 }
 0x39b   :  { %2081 = vmatprep.subr.bf16.mxu0 %v2628_v3 }
 0x39e   :  { %2082 = vmatpush3.bf16.msra.mxu0 %v2285_v62 }
 0x39f   :  { %2083 = vmatprep.subr.bf16.mxu0 %v2628_v3 }
 0x3a2   :  { %2084 = vmatpush3.bf16.msra.mxu0 %v2286_v63 }
 0x3a3   :  { %2085 = vmatprep.subr.bf16.mxu0 %v2628_v3 }
 0x3a6   :  { %2086 = vmatpush3.bf16.msra.mxu0 %v2287_v4 }
 0x3a7   :  { %2087 = vmatprep.subr.bf16.mxu0 %v2628_v3 }
 0x3aa   :  { %2088 = vmatpush3.bf16.msra.mxu0 %v2288_v5 }
 0x3ab   :  { %2089 = vmatprep.subr.bf16.mxu0 %v2628_v3 }
 0x3ae   :  { %2090 = vmatpush3.bf16.msra.mxu0 %v2289_v6 }
 0x3af   :  { %2091 = vmatprep.subr.bf16.mxu0 %v2628_v3 }
 0x3b2   :  { %2092 = vmatpush3.bf16.msra.mxu0 %v2290_v7 }
 0x455   :  { %v1319_v41 = vpop.f32.mrf.mxu0 }
 0x456   :  { %v1320_v42 = vadd.f32 %v1883_v39, %v1319_v41 }
 0x457   :  { %v2055_v43 = vpop.f32.mrf.mxu0 }
 0x458   :  { %v1328_v46 = vmin.f32 %v1320_v42, 0.0  ;;  %v1326_v50 = vmax.f32 %v1320_v42, 0.0 }
 0x459   :  { %v1322_v47 = vpop.f32.mrf.mxu0 }
 0x45a   :  { %v1323_v49 = vadd.f32 %v1883_v39, %v1322_v47  ;;  %v1331_v51 = vmul.f32 %v1330_v44, %v1328_v46 }
 0x45b   :  { %v2056_v52 = vpop.f32.mrf.mxu0 }
 0x45c   :  { %v1329_v53 = vmin.f32 %v1323_v49, 0.0  ;;  %v1333_v54 = vadd.f32 %v1331_v51, %v1326_v50  ;;  %v1327_v55 = vmax.f32 %v1323_v49, 0.0  ;;  %v1918_v49 = vld [vmem:[%s3136_s20] ss:$0 sm:$0xff] }
 0x45e   :  { %v1931_v56 = vpack.c.bf16 %v1333_v54, %v1333_v54  ;;  %v1332_v57 = vmul.f32 %v1330_v44, %v1329_v53  ;;  %v1731_v54 = vstv %s1917_s19 }
 0x460   :  { %1351 = vrot.lane.b32.xlu0 %v1931_v56, %s2611_s13  ;;  %v1334_v58 = vadd.f32 %v1332_v57, %v1327_v55 }
 0x462   :  { %v1932_v60 = vpack.c.bf16 %v1334_v58, %v1334_v58 }
 0x464   :  { %1353 = vrot.lane.b32.xlu0 %v1932_v60, %s2611_s13 }
 0x4d2   :  { %v1352_v0 = vpop.permute.xlu0 %1351 }
 0x4d3   :  { %1358 = vst.msk [vmem:[#allocation2] sm:$0xf] %vm1357_vm4, %v1352_v0 }
 0x4d6   :  { %v1354_v1 = vpop.permute.xlu0 %1353 }
 0x4d7   :  { %1359 = vst.msk [vmem:[#allocation2 + $0x4] sm:$0xf] %vm1357_vm4, %v1354_v1 }
 0x4de   :  { %v2282_v2 = vld [vmem:[#allocation2] sm:$0xff]  }
 0x4df   :  { %2074 = vmatmul.mubr.bf16.vlgmr.msra.gmra.mxu1 %v2282_v2  ;;  %v1927_v2 = vld [vmem:[%s3137_s21] ss:$0 sm:$0xff] }
 0x4e0   :  { %2113 = vmatprep.mubr.msk.bf16.mxu1 %vm2629_vm1, %v2628_v3  ;;  %2098 = vmatpush3.bf16.msra.mxu1 %v2291_v8 }
 0x4e1   :  { %2099 = vmatprep.subr.bf16.mxu1 %v2628_v3 }
 0x4e4   :  { %2100 = vmatpush3.bf16.msra.mxu1 %v2292_v9 }
 0x4e5   :  { %2101 = vmatprep.subr.bf16.mxu1 %v2628_v3 }
 0x4e8   :  { %2102 = vmatpush3.bf16.msra.mxu1 %v2293_v10  ;;  %v1928_v10 = vld [vmem:[#allocation5] ss:$0 sm:$0xff] }
 0x4e9   :  { %2103 = vmatprep.subr.bf16.mxu1 %v2628_v3 }
 0x4ec   :  { %2104 = vmatpush3.bf16.msra.mxu1 %v2294_v11 }
 0x4ed   :  { %2105 = vmatprep.subr.bf16.mxu1 %v2628_v3 }
 0x4f0   :  { %2106 = vmatpush3.bf16.msra.mxu1 %v2295_v29 }
 0x4f1   :  { %2107 = vmatprep.subr.bf16.mxu1 %v2628_v3 }
 0x4f4   :  { %2108 = vmatpush3.bf16.msra.mxu1 %v2296_v30 }
 0x4f5   :  { %2109 = vmatprep.subr.bf16.mxu1 %v2628_v3 }
 0x4f8   :  { %2110 = vmatpush3.bf16.msra.mxu1 %v2297_v31 }
 0x4f9   :  { %2111 = vmatprep.subr.bf16.mxu1 %v2628_v3 }
 0x4fc   :  { %2112 = vmatpush3.bf16.msra.mxu1 %v2298_v32 }
 0x59f   :  { %v1474_v15 = vpop.f32.mrf.mxu1 }
 0x5a0   :  { %v1475_v17 = vadd.f32 %v1897_v12, %v1474_v15 }
 0x5a1   :  { %v2075_v18 = vpop.f32.mrf.mxu1 }
 0x5a2   :  { %v1483_v19 = vmin.f32 %v1475_v17, 0.0  ;;  %v1481_v14 = vmax.f32 %v1475_v17, 0.0 }
 0x5a3   :  { %v1477_v21 = vpop.f32.mrf.mxu1 }
 0x5a4   :  { %v1478_v22 = vadd.f32 %v1897_v12, %v1477_v21  ;;  %v1486_v24 = vmul.f32 %v1485_v20, %v1483_v19 }
 0x5a5   :  { %v2076_v23 = vpop.f32.mrf.mxu1 }
 0x5a6   :  { %v1484_v25 = vmin.f32 %v1478_v22, 0.0  ;;  %v1482_v26 = vmax.f32 %v1478_v22, 0.0  ;;  %v1488_v16 = vadd.f32 %v1486_v24, %v1481_v14 }
 0x5a8   :  { %v1487_v13 = vmul.f32 %v1485_v20, %v1484_v25 }
 0x5aa   :  { %v1489_v27 = vadd.f32 %v1487_v13, %v1482_v26 }
 0x5ac   :  { %v1490_v28 = vpack.c.bf16 %v1489_v27, %v1488_v16 }
 0x5ae   :  { %2094 = vmatmul.mubr.bf16.vlgmr.msra.gmra.mxu0 %v1490_v28 }
 0x66e   :  { %v1597_v34 = vpop.f32.mrf.mxu0 }
 0x66f   :  { %v1598_v35 = vadd.f32 %v1908_v33, %v1597_v34 }
 0x670   :  { %v2095_v36 = vpop.f32.mrf.mxu0 }
 0x671   :  { %v1606_v37 = vmin.f32 %v1598_v35, 0.0  ;;  %v1604_v44 = vmax.f32 %v1598_v35, 0.0 }
 0x672   :  { %v1600_v39 = vpop.f32.mrf.mxu0 }
 0x673   :  { %v1601_v40 = vadd.f32 %v1908_v33, %v1600_v39  ;;  %v1609_v42 = vmul.f32 %v1608_v38, %v1606_v37 }
 0x674   :  { %v2096_v41 = vpop.f32.mrf.mxu0 }
 0x675   :  { %v1607_v43 = vmin.f32 %v1601_v40, 0.0  ;;  %v1605_v45 = vmax.f32 %v1601_v40, 0.0  ;;  %v1611_v46 = vadd.f32 %v1609_v42, %v1604_v44 }
 0x677   :  { %v1610_v3 = vmul.f32 %v1608_v38, %v1607_v43 }
 0x679   :  { %v1612_v47 = vadd.f32 %v1610_v3, %v1605_v45 }
 0x67b   :  { %v1613_v48 = vpack.c.bf16 %v1612_v47, %v1611_v46 }
 0x67d   :  { %2114 = vmatmul.mubr.bf16.vlgmr.msra.gmra.mxu1 %v1613_v48 }
 0x73d   :  { %v1720_v50 = vpop.f32.mrf.mxu1 }
 0x73e   :  { %v1721_v51 = vadd.f32 %v1918_v49, %v1720_v50 }
 0x73f   :  { %v2115_v52 = vpop.f32.mrf.mxu1 }
 0x740   :  { %v1729_v53 = vmin.f32 %v1721_v51, 0.0  ;;  %v1727_v60 = vmax.f32 %v1721_v51, 0.0 }
 0x741   :  { %v1723_v55 = vpop.f32.mrf.mxu1 }
 0x742   :  { %v1724_v56 = vadd.f32 %v1918_v49, %v1723_v55  ;;  %v1732_v58 = vmul.f32 %v1731_v54, %v1729_v53 }
 0x743   :  { %v2116_v57 = vpop.f32.mrf.mxu1 }
 0x744   :  { %v1730_v59 = vmin.f32 %v1724_v56, 0.0  ;;  %v1728_v61 = vmax.f32 %v1724_v56, 0.0  ;;  %v1734_v63 = vadd.f32 %v1732_v58, %v1727_v60 }
 0x746   :  { %v1733_v62 = vmul.f32 %v1731_v54, %v1730_v59 }
 0x748   :  { %v1735_v0 = vadd.f32 %v1733_v62, %v1728_v61 }
 0x74a   :  { %v1736_v1 = vpack.c.bf16 %v1735_v0, %v1734_v63 }
 0x74c   :  { %v1737_v4 = vunpack.c.l.bf16 %v1736_v1  ;;  %v1738_v5 = vunpack.c.h.bf16 %v1736_v1 }
 0x74e   :  { %v1746_v6 = vmul.f32 %v1927_v2, %v1737_v4  ;;  %v1747_v8 = vmul.f32 %v1927_v2, %v1738_v5 }
 0x750   :  { %v1749_v7 = vsel %vm1748_vm5, %v1746_v6, 0.0  ;;  %v1752_v9 = vsel %vm1748_vm5, %v1747_v8, 0.0 }
 0x751   :  { %1750 = vadd.xlane.f32.xlu1 %v1749_v7 }
 0x755   :  { %1753 = vadd.xlane.f32.xlu1 %v1752_v9 }
 0x7da   :  { %v1751_v11 = vpop.xlane.xlu1 %1750 }
 0x7db   :  { %v1762_v12 = vadd.f32 %v1928_v10, %v1751_v11 }
 0x7dd   :  { %1765 = vst.msk [vmem:[%s3138_s23] sm:$0xff] %vm1764_vm6, %v1762_v12 }
 0x7de   :  { %v1754_v15 = vpop.xlane.xlu1 %1753 }
 0x7df   :  { %v1763_v17 = vadd.f32 %v1928_v10, %v1754_v15 }
 0x7e1   :  { %1766 = vst.msk [vmem:[%s3138_s23 + $0x8] sm:$0xff] %vm1764_vm6, %v1763_v17 }
 0x7e2   :  { %1771 = vsyncpa [#allocation7], 1 }
 0x7e3   :  { %1772 = vsyncpa [#allocation9], 1 }
 0x7e4   :  { %1773 = vsyncpa [#allocation12], 1 }
 0x7e5   :  { %1774 = vsyncpa [#allocation15], 1 }
 0x7e6   :  { %1775 = vsyncpa [#allocation18], 1 }
 0x7e7   :  { %1776 = vsyncpa [#allocation21], 1 }
 0x7e8   :  { %1777 = vsyncpa [#allocation24], 1 }
 0x7e9   :  { %1778 = vsyncpa [#allocation27], 1 }

</bundles_post_ra>
